<compile_context>
chip_gen: v5e
topology: v5e:2x2
jax: 0.10.0
libtpu: 0.0.40
codegen_flags: <defaults>
</compile_context>

<pallas_src>
import jax
import jax.numpy as jnp
from jax import lax
from jax.experimental import pallas as pl
from jax.experimental.pallas import tpu as pltpu

# ----------------------------- problem sizes ------------------------------
BATCH     = 2      # meta batch size
NUM_FRAME = 2      # frames per batch element
N_RAYS    = 128    # rays per frame
FEAT      = 32     # ray feature width (stand-in for NeRF features)
OUT       = 3      # rgb / xyz channels
AUX       = 3 * OUT  # resd | gradients | observed_gradients concatenated

INNER_STEPS = 32
LR, B1, B2, ADAM_EPS = 5e-4, 0.9, 0.999, 1e-8


# ---------------------------------------------------------------------------
# Fused inner-loop kernel: one grid step == one batch element.
#   inputs : feat (NF,N,F), rgb (NF,N,C), mask (NF,N,1), W_rgb (F,C), W_aux (F,9)
#   outputs: final inner W_rgb (F,C) [VMEM], last-iteration stats (1,1,4) [SMEM]
#   scratch: W / Adam m / Adam v  (F,C) f32, resident in VMEM for all 32 steps.
# ---------------------------------------------------------------------------
def _fused_inner_kernel(feat_ref, rgb_ref, mask_ref, w0_ref, waux_ref,
                        wout_ref, stats_ref, w_sc, m_sc, v_sc):
    nf = feat_ref.shape[0]

    # --- per-batch-element optimizer state (scratch persists across the grid,
    #     so re-initialize it every grid step) ---
    w_sc[...] = w0_ref[...].astype(jnp.float32)
    m_sc[...] = jnp.zeros_like(m_sc)
    v_sc[...] = jnp.zeros_like(v_sc)

    # --- loop-invariant aux losses, hoisted out of the 32-step loop.
    #     They depend only on the frame and on weights never updated inside the
    #     loop, so compute them once, on the frame used by the LAST inner
    #     iteration (matching the PyTorch "last iteration" scalar_stats).
    #     The three heads are merged into one (F, 9) matmul.
    last_f = (INNER_STEPS - 1) % nf
    Xl = feat_ref[last_f].astype(jnp.float32)                         # (N, F)
    aux = jnp.dot(Xl, waux_ref[...].astype(jnp.float32),
                  preferred_element_type=jnp.float32)                 # (N, 9)
    resd   = aux[:, 0:3]
    gradv  = aux[:, 3:6]
    ogradv = aux[:, 6:9]
    r_norm  = jnp.sqrt(jnp.sum(resd * resd,     axis=-1, keepdims=True))
    g_norm  = jnp.sqrt(jnp.sum(gradv * gradv,   axis=-1, keepdims=True))
    og_norm = jnp.sqrt(jnp.sum(ogradv * ogradv, axis=-1, keepdims=True))
    stats_ref[0, 0, 0] = jnp.mean(r_norm)                # offset_loss
    stats_ref[0, 0, 1] = jnp.mean((g_norm - 1.0) ** 2)   # grad_loss (eikonal)
    stats_ref[0, 0, 2] = jnp.mean((og_norm - 1.0) ** 2)  # ograd_loss (eikonal)

    # --- 32 Adam steps on the rgb head, entirely in VMEM ---
    def body(i, carry):
        b1t, b2t = carry
        f = i % nf
        X   = feat_ref[f].astype(jnp.float32)                         # (N, F)
        y   = rgb_ref[f].astype(jnp.float32)                          # (N, C)
        msk = mask_ref[f].astype(jnp.float32)                         # (N, 1)

        W = w_sc[...]
        pred = jnp.dot(X, W, preferred_element_type=jnp.float32)      # (N, C)
        diff = (pred - y) * msk                                        # masked residual
        inv_denom = 1.0 / jnp.maximum(jnp.sum(msk) * 3.0, 1e-6)        # guard empty mask
        img_loss = jnp.sum(diff * diff) * inv_denom                    # img2mse on mask
        stats_ref[0, 0, 3] = img_loss     # last write wins == last-iteration stat

        # dL/dW = 2/denom * X^T @ diff   (contract over rays; X reused from above)
        gW = lax.dot_general(X, diff, (((0,), (0,)), ((), ())),
                             preferred_element_type=jnp.float32) * (2.0 * inv_denom)

        # Adam (torch.optim.Adam defaults, lr=5e-4)
        b1t = b1t * B1
        b2t = b2t * B2
        m = B1 * m_sc[...] + (1.0 - B1) * gW
        v = B2 * v_sc[...] + (1.0 - B2) * (gW * gW)
        mhat = m * (1.0 / (1.0 - b1t))
        vhat = v * (1.0 / (1.0 - b2t))
        w_sc[...] = W - LR * mhat / (jnp.sqrt(vhat) + ADAM_EPS)
        m_sc[...] = m
        v_sc[...] = v
        return (b1t, b2t)

    lax.fori_loop(0, INNER_STEPS, body, (jnp.float32(1.0), jnp.float32(1.0)))

    wout_ref[...] = w_sc[...].astype(wout_ref.dtype)


def fused_inner_loop(feats, rgbs, masks, w_rgb, w_aux):
    """feats (B,NF,N,F), rgbs (B,NF,N,C), masks (B,NF,N,1), w_rgb (F,C), w_aux (F,9)."""
    B, NF, N, F = feats.shape
    C = w_rgb.shape[1]
    A = w_aux.shape[1]
    w_out, stats = pl.pallas_call(
        _fused_inner_kernel,
        grid=(B,),
        in_specs=[
            pl.BlockSpec((None, NF, N, F), lambda b: (b, 0, 0, 0)),
            pl.BlockSpec((None, NF, N, C), lambda b: (b, 0, 0, 0)),
            pl.BlockSpec((None, NF, N, 1), lambda b: (b, 0, 0, 0)),
            pl.BlockSpec((F, C), lambda b: (0, 0)),
            pl.BlockSpec((F, A), lambda b: (0, 0)),
        ],
        out_specs=(
            pl.BlockSpec((None, F, C), lambda b: (b, 0, 0)),
            pl.BlockSpec((1, 1, 4), lambda b: (b, 0, 0),
                         memory_space=pltpu.MemorySpace.SMEM),
        ),
        out_shape=(
            jax.ShapeDtypeStruct((B, F, C), jnp.float32),   # final inner W_rgb
            jax.ShapeDtypeStruct((B, 1, 4), jnp.float32),   # [offset, grad, ograd, img]
        ),
        scratch_shapes=[
            pltpu.VMEM((F, C), jnp.float32),   # W (inner params of rgb head)
            pltpu.VMEM((F, C), jnp.float32),   # Adam m
            pltpu.VMEM((F, C), jnp.float32),   # Adam v
        ],
        compiler_params=pltpu.CompilerParams(
            dimension_semantics=("parallel",)),
    )(feats, rgbs, masks, w_rgb, w_aux)
    return w_out, stats


# ---------------------------------------------------------------------------
# forward: fused per-batch inner loops + Reptile meta-gradient (plain jit JAX).
# ---------------------------------------------------------------------------
def _forward(params, feats, rgbs, masks):
    W_rgb, W_resd, W_grad, W_ograd = params
    # merge the three "loss head" weight matrices into one (F, 9) operand
    w_aux = jnp.concatenate([W_resd, W_grad, W_ograd], axis=1)

    w_inner, stats = fused_inner_loop(feats, rgbs, masks, W_rgb, w_aux)
    stats = stats[:, 0, :]                                 # (B, 4)
    offset_l, grad_l, ograd_l, img_l = (stats[:, 0], stats[:, 1],
                                        stats[:, 2], stats[:, 3])
    # TODO(synk): crit.sdf_mask_crit needs the external SDF decoder; no Pallas equivalent.
    mask_l = jnp.zeros_like(img_l)
    loss_b = 0.01 * offset_l + mask_l + 0.1 * grad_l + 0.1 * ograd_l + img_l

    scalar_stats = {
        'offset_loss': jnp.mean(offset_l),
        'mask_loss':   jnp.mean(mask_l),
        'grad_loss':   jnp.mean(grad_l),
        'ograd_loss':  jnp.mean(ograd_l),
        'img_loss':    jnp.mean(img_l),
        'loss':        jnp.mean(loss_b),
    }
    loss = scalar_stats['loss']

    # Reptile meta-gradient: p.grad = 0 + mean_b(p - inner_p_b).  Tiny (32,3)
    # arrays -> plain fused XLA elementwise ops, no pallas_call needed.
    # TODO(synk): only the rgb head gets analytic inner gradients here (the real
    # trainer backprops the total loss through the full tpose NeRF net), so the
    # inner params of the other heads are unchanged and their meta-grad is 0.
    grads = [
        W_rgb - jnp.mean(w_inner, axis=0),
        jnp.zeros_like(W_resd),
        jnp.zeros_like(W_grad),
        jnp.zeros_like(W_ograd),
    ]

    ret = {}
    image_stats = {}
    return ret, loss, scalar_stats, image_stats, grads


forward = jax.jit(_forward)


# ---------------------------------------------------------------------------
if __name__ == "__main__":
    k = jax.random.split(jax.random.PRNGKey(0), 8)

    # deterministic synthetic "net": four linear heads (rgb / resd / grad / ograd)
    params = [0.05 * jax.random.normal(k[i], (FEAT, OUT), jnp.float32)
              for i in range(4)]

    # synthetic batch: (B, num_frame, N_rays, ...) channels-last
    feats = jax.random.normal(k[4], (BATCH, NUM_FRAME, N_RAYS, FEAT), jnp.float32)
    rgbs  = jax.random.uniform(k[5], (BATCH, NUM_FRAME, N_RAYS, OUT),
                               dtype=jnp.float32)
    masks = (jax.random.uniform(k[6], (BATCH, NUM_FRAME, N_RAYS, 1)) > 0.3
             ).astype(jnp.float32)                         # mask_at_box

    ret, loss, scalar_stats, image_stats, grads = forward(params, feats, rgbs, masks)
    jax.block_until_ready((loss, scalar_stats, grads))

    assert bool(jnp.isfinite(loss)), "non-finite loss"
    assert all(bool(jnp.all(jnp.isfinite(g))) for g in grads), "non-finite grads"
    print("KERNEL_OK")
</pallas_src>

<mosaic_0001>
module attributes {stable_mosaic.version = 11 : i64} {
  func.func @_fused_inner_kernel(%arg0: i32, %arg1: memref<1x2x128x32xf32, #tpu.memory_space<vmem>>, %arg2: memref<1x2x128x3xf32, #tpu.memory_space<vmem>>, %arg3: memref<1x2x128x1xf32, #tpu.memory_space<vmem>>, %arg4: memref<32x3xf32, #tpu.memory_space<vmem>>, %arg5: memref<32x9xf32, #tpu.memory_space<vmem>>, %arg6: memref<1x32x3xf32, #tpu.memory_space<vmem>>, %arg7: memref<1x1x4xf32, #tpu.memory_space<smem>>, %arg8: memref<32x3xf32, #tpu.memory_space<vmem>>, %arg9: memref<32x3xf32, #tpu.memory_space<vmem>>, %arg10: memref<32x3xf32, #tpu.memory_space<vmem>>) attributes {dimension_semantics = [#tpu.dimension_semantics<parallel>], iteration_bounds = array<i64: 2>, scalar_prefetch = 0 : i64, scratch_operands = 3 : i64, tpu.core_type = #tpu.core_type<tc>, window_params = [{transform_indices = @transform_0, window_bounds = array<i64: 1, 2, 128, 32>}, {transform_indices = @transform_1, window_bounds = array<i64: 1, 2, 128, 3>}, {transform_indices = @transform_2, window_bounds = array<i64: 1, 2, 128, 1>}, {pipeline_mode = #tpu.pipeline_mode<synchronous>, transform_indices = @transform_3, window_bounds = array<i64: 32, 3>}, {pipeline_mode = #tpu.pipeline_mode<synchronous>, transform_indices = @transform_4, window_bounds = array<i64: 32, 9>}, {transform_indices = @transform_5, window_bounds = array<i64: 1, 32, 3>}, {transform_indices = @transform_6, window_bounds = array<i64: 1, 1, 4>}]} {
    %c0 = arith.constant 0 : index
    %c0_0 = arith.constant 0 : index
    %0 = vector.load %arg4[%c0, %c0_0] : memref<32x3xf32, #tpu.memory_space<vmem>>, vector<32x3xf32>
    %c0_1 = arith.constant 0 : index
    %c0_2 = arith.constant 0 : index
    %1 = vector.load %arg8[%c0_1, %c0_2] : memref<32x3xf32, #tpu.memory_space<vmem>>, vector<32x3xf32>
    tpu.vector_store %arg8[%c0_1, %c0_2], %0 {strides = array<i32>} : memref<32x3xf32, #tpu.memory_space<vmem>>, vector<32x3xf32>,
    %cst = arith.constant 0.000000e+00 : f32
    %2 = vector.broadcast %cst : f32 to vector<32x3xf32>
    %c0_3 = arith.constant 0 : index
    %c0_4 = arith.constant 0 : index
    %3 = vector.load %arg9[%c0_3, %c0_4] : memref<32x3xf32, #tpu.memory_space<vmem>>, vector<32x3xf32>
    tpu.vector_store %arg9[%c0_3, %c0_4], %2 {strides = array<i32>} : memref<32x3xf32, #tpu.memory_space<vmem>>, vector<32x3xf32>,
    %cst_5 = arith.constant 0.000000e+00 : f32
    %4 = vector.broadcast %cst_5 : f32 to vector<32x3xf32>
    %c0_6 = arith.constant 0 : index
    %c0_7 = arith.constant 0 : index
    %5 = vector.load %arg10[%c0_6, %c0_7] : memref<32x3xf32, #tpu.memory_space<vmem>>, vector<32x3xf32>
    tpu.vector_store %arg10[%c0_6, %c0_7], %4 {strides = array<i32>} : memref<32x3xf32, #tpu.memory_space<vmem>>, vector<32x3xf32>,
    %c0_8 = arith.constant 0 : index
    %c1 = arith.constant 1 : index
    %c0_9 = arith.constant 0 : index
    %c0_10 = arith.constant 0 : index
    %6 = vector.load %arg1[%c0_8, %c1, %c0_9, %c0_10] : memref<1x2x128x32xf32, #tpu.memory_space<vmem>>, vector<1x1x128x32xf32>
    %7 = vector.shape_cast %6 : vector<1x1x128x32xf32> to vector<128x32xf32>
    %c0_11 = arith.constant 0 : index
    %c0_12 = arith.constant 0 : index
    %8 = vector.load %arg5[%c0_11, %c0_12] : memref<32x9xf32, #tpu.memory_space<vmem>>, vector<32x9xf32>
    %cst_13 = arith.constant dense<0.000000e+00> : vector<128x9xf32>
    %9 = tpu.matmul %7, %8, %cst_13 {dimension_numbers = #tpu.dot_dimension_numbers<[1], [0], [0], [1], [0, 0, 1, 1], [], []>} : vector<128x32xf32>, vector<32x9xf32>, vector<128x9xf32> -> vector<128x9xf32>
    %10 = vector.extract_strided_slice %9 {offsets = [0, 0], sizes = [128, 3], strides = [1, 1]} : vector<128x9xf32> to vector<128x3xf32>
    %11 = vector.extract_strided_slice %9 {offsets = [0, 3], sizes = [128, 3], strides = [1, 1]} : vector<128x9xf32> to vector<128x3xf32>
    %12 = vector.extract_strided_slice %9 {offsets = [0, 6], sizes = [128, 3], strides = [1, 1]} : vector<128x9xf32> to vector<128x3xf32>
    %13 = arith.mulf %10, %10 : vector<128x3xf32>
    %cst_14 = arith.constant dense<0.000000e+00> : vector<128xf32>
    %14 = vector.multi_reduction <add>, %13, %cst_14 [1] : vector<128x3xf32> to vector<128xf32>
    %15 = vector.shape_cast %14 : vector<128xf32> to vector<128x1xf32>
    %16 = math.sqrt %15 : vector<128x1xf32>
    %17 = arith.mulf %11, %11 : vector<128x3xf32>
    %cst_15 = arith.constant dense<0.000000e+00> : vector<128xf32>
    %18 = vector.multi_reduction <add>, %17, %cst_15 [1] : vector<128x3xf32> to vector<128xf32>
    %19 = vector.shape_cast %18 : vector<128xf32> to vector<128x1xf32>
    %20 = math.sqrt %19 : vector<128x1xf32>
    %21 = arith.mulf %12, %12 : vector<128x3xf32>
    %cst_16 = arith.constant dense<0.000000e+00> : vector<128xf32>
    %22 = vector.multi_reduction <add>, %21, %cst_16 [1] : vector<128x3xf32> to vector<128xf32>
    %23 = vector.shape_cast %22 : vector<128xf32> to vector<128x1xf32>
    %24 = math.sqrt %23 : vector<128x1xf32>
    %25 = vector.shape_cast %16 : vector<128x1xf32> to vector<1x128x1xf32>
    %cst_17 = arith.constant dense<0.000000e+00> : vector<1xf32>
    %26 = vector.multi_reduction <add>, %25, %cst_17 [1, 2] : vector<1x128x1xf32> to vector<1xf32>
    %27 = vector.shape_cast %26 : vector<1xf32> to vector<1x1x1xf32>
    %28 = vector.extract %27[0, 0, 0] : f32 from vector<1x1x1xf32>
    %cst_18 = arith.constant 1.280000e+02 : f32
    %29 = arith.divf %28, %cst_18 : f32
    %c0_19 = arith.constant 0 : index
    %c0_20 = arith.constant 0 : index
    %c0_21 = arith.constant 0 : index
    %30 = memref.load %arg7[%c0_19, %c0_20, %c0_21] : memref<1x1x4xf32, #tpu.memory_space<smem>>
    memref.store %29, %arg7[%c0_19, %c0_20, %c0_21] : memref<1x1x4xf32, #tpu.memory_space<smem>>
    %cst_22 = arith.constant 1.000000e+00 : f32
    %31 = vector.broadcast %cst_22 : f32 to vector<128x1xf32>
    %32 = arith.subf %20, %31 : vector<128x1xf32>
    %33 = arith.mulf %32, %32 : vector<128x1xf32>
    %34 = vector.shape_cast %33 : vector<128x1xf32> to vector<1x128x1xf32>
    %cst_23 = arith.constant dense<0.000000e+00> : vector<1xf32>
    %35 = vector.multi_reduction <add>, %34, %cst_23 [1, 2] : vector<1x128x1xf32> to vector<1xf32>
    %36 = vector.shape_cast %35 : vector<1xf32> to vector<1x1x1xf32>
    %37 = vector.extract %36[0, 0, 0] : f32 from vector<1x1x1xf32>
    %cst_24 = arith.constant 1.280000e+02 : f32
    %38 = arith.divf %37, %cst_24 : f32
    %c0_25 = arith.constant 0 : index
    %c0_26 = arith.constant 0 : index
    %c1_27 = arith.constant 1 : index
    %39 = memref.load %arg7[%c0_25, %c0_26, %c1_27] : memref<1x1x4xf32, #tpu.memory_space<smem>>
    memref.store %38, %arg7[%c0_25, %c0_26, %c1_27] : memref<1x1x4xf32, #tpu.memory_space<smem>>
    %cst_28 = arith.constant 1.000000e+00 : f32
    %40 = vector.broadcast %cst_28 : f32 to vector<128x1xf32>
    %41 = arith.subf %24, %40 : vector<128x1xf32>
    %42 = arith.mulf %41, %41 : vector<128x1xf32>
    %43 = vector.shape_cast %42 : vector<128x1xf32> to vector<1x128x1xf32>
    %cst_29 = arith.constant dense<0.000000e+00> : vector<1xf32>
    %44 = vector.multi_reduction <add>, %43, %cst_29 [1, 2] : vector<1x128x1xf32> to vector<1xf32>
    %45 = vector.shape_cast %44 : vector<1xf32> to vector<1x1x1xf32>
    %46 = vector.extract %45[0, 0, 0] : f32 from vector<1x1x1xf32>
    %cst_30 = arith.constant 1.280000e+02 : f32
    %47 = arith.divf %46, %cst_30 : f32
    %c0_31 = arith.constant 0 : index
    %c0_32 = arith.constant 0 : index
    %c2 = arith.constant 2 : index
    %48 = memref.load %arg7[%c0_31, %c0_32, %c2] : memref<1x1x4xf32, #tpu.memory_space<smem>>
    memref.store %47, %arg7[%c0_31, %c0_32, %c2] : memref<1x1x4xf32, #tpu.memory_space<smem>>
    %cst_33 = arith.constant 1.000000e+00 : f32
    %cst_34 = arith.constant 1.000000e+00 : f32
    %c0_i32 = arith.constant 0 : i32
    %c32_i32 = arith.constant 32 : i32
    %49 = arith.addi %c0_i32, %c32_i32 : i32
    %c1_i32 = arith.constant 1 : i32
    %50:2 = scf.for %arg11 = %c0_i32 to %49 step %c1_i32 iter_args(%arg12 = %cst_33, %arg13 = %cst_34) -> (f32, f32)  : i32 {
      %c2_i32 = arith.constant 2 : i32
      %c0_i32_41 = arith.constant 0 : i32
      %55 = arith.cmpi eq, %c2_i32, %c0_i32_41 : i32
      %c1_i32_42 = arith.constant 1 : i32
      %56 = arith.select %55, %c1_i32_42, %c2_i32 : i32
      %57 = arith.remsi %arg11, %56 : i32
      %c0_i32_43 = arith.constant 0 : i32
      %58 = arith.cmpi ne, %57, %c0_i32_43 : i32
      %c0_i32_44 = arith.constant 0 : i32
      %59 = arith.cmpi slt, %57, %c0_i32_44 : i32
      %c0_i32_45 = arith.constant 0 : i32
      %60 = arith.cmpi slt, %56, %c0_i32_45 : i32
      %61 = arith.xori %59, %60 : i1
      %62 = arith.andi %61, %58 : i1
      %63 = arith.addi %57, %56 : i32
      %64 = arith.select %62, %63, %57 : i32
      %c0_46 = arith.constant 0 : index
      %65 = arith.index_cast %64 : i32 to index
      %c0_47 = arith.constant 0 : index
      %c0_48 = arith.constant 0 : index
      %66 = vector.load %arg1[%c0_46, %65, %c0_47, %c0_48] : memref<1x2x128x32xf32, #tpu.memory_space<vmem>>, vector<1x1x128x32xf32>
      %67 = vector.shape_cast %66 : vector<1x1x128x32xf32> to vector<128x32xf32>
      %c0_49 = arith.constant 0 : index
      %68 = arith.index_cast %64 : i32 to index
      %c0_50 = arith.constant 0 : index
      %c0_51 = arith.constant 0 : index
      %69 = vector.load %arg2[%c0_49, %68, %c0_50, %c0_51] : memref<1x2x128x3xf32, #tpu.memory_space<vmem>>, vector<1x1x128x3xf32>
      %70 = vector.shape_cast %69 : vector<1x1x128x3xf32> to vector<128x3xf32>
      %c0_52 = arith.constant 0 : index
      %71 = arith.index_cast %64 : i32 to index
      %c0_53 = arith.constant 0 : index
      %c0_54 = arith.constant 0 : index
      %72 = vector.load %arg3[%c0_52, %71, %c0_53, %c0_54] : memref<1x2x128x1xf32, #tpu.memory_space<vmem>>, vector<1x1x128x1xf32>
      %73 = vector.shape_cast %72 : vector<1x1x128x1xf32> to vector<128x1xf32>
      %c0_55 = arith.constant 0 : index
      %c0_56 = arith.constant 0 : index
      %74 = vector.load %arg8[%c0_55, %c0_56] : memref<32x3xf32, #tpu.memory_space<vmem>>, vector<32x3xf32>
      %cst_57 = arith.constant dense<0.000000e+00> : vector<128x3xf32>
      %75 = tpu.matmul %67, %74, %cst_57 {dimension_numbers = #tpu.dot_dimension_numbers<[1], [0], [0], [1], [0, 0, 1, 1], [], []>} : vector<128x32xf32>, vector<32x3xf32>, vector<128x3xf32> -> vector<128x3xf32>
      %76 = arith.subf %75, %70 : vector<128x3xf32>
      %77 = vector.broadcast %73 : vector<128x1xf32> to vector<128x3xf32>
      %78 = arith.mulf %76, %77 : vector<128x3xf32>
      %79 = vector.shape_cast %73 : vector<128x1xf32> to vector<1x128x1xf32>
      %cst_58 = arith.constant dense<0.000000e+00> : vector<1xf32>
      %80 = vector.multi_reduction <add>, %79, %cst_58 [1, 2] : vector<1x128x1xf32> to vector<1xf32>
      %81 = vector.shape_cast %80 : vector<1xf32> to vector<1x1x1xf32>
      %82 = vector.extract %81[0, 0, 0] : f32 from vector<1x1x1xf32>
      %cst_59 = arith.constant 3.000000e+00 : f32
      %83 = arith.mulf %82, %cst_59 : f32
      %cst_60 = arith.constant 9.99999997E-7 : f32
      %84 = arith.maximumf %83, %cst_60 : f32
      %cst_61 = arith.constant 1.000000e+00 : f32
      %85 = arith.divf %cst_61, %84 : f32
      %86 = arith.mulf %78, %78 : vector<128x3xf32>
      %87 = vector.shape_cast %86 : vector<128x3xf32> to vector<1x128x3xf32>
      %cst_62 = arith.constant dense<0.000000e+00> : vector<1xf32>
      %88 = vector.multi_reduction <add>, %87, %cst_62 [1, 2] : vector<1x128x3xf32> to vector<1xf32>
      %89 = vector.shape_cast %88 : vector<1xf32> to vector<1x1x1xf32>
      %90 = vector.extract %89[0, 0, 0] : f32 from vector<1x1x1xf32>
      %91 = arith.mulf %90, %85 : f32
      %c0_63 = arith.constant 0 : index
      %c0_64 = arith.constant 0 : index
      %c3 = arith.constant 3 : index
      %92 = memref.load %arg7[%c0_63, %c0_64, %c3] : memref<1x1x4xf32, #tpu.memory_space<smem>>
      memref.store %91, %arg7[%c0_63, %c0_64, %c3] : memref<1x1x4xf32, #tpu.memory_space<smem>>
      %cst_65 = arith.constant dense<0.000000e+00> : vector<32x3xf32>
      %93 = tpu.matmul %67, %78, %cst_65 {dimension_numbers = #tpu.dot_dimension_numbers<[0], [0], [1], [1], [0, 1, 1, 1], [], []>} : vector<128x32xf32>, vector<128x3xf32>, vector<32x3xf32> -> vector<32x3xf32>
      %cst_66 = arith.constant 2.000000e+00 : f32
      %94 = arith.mulf %cst_66, %85 : f32
      %95 = vector.broadcast %94 : f32 to vector<32x3xf32>
      %96 = arith.mulf %93, %95 : vector<32x3xf32>
      %cst_67 = arith.constant 0.899999976 : f32
      %97 = arith.mulf %arg12, %cst_67 : f32
      %cst_68 = arith.constant 9.990000e-01 : f32
      %98 = arith.mulf %arg13, %cst_68 : f32
      %c0_69 = arith.constant 0 : index
      %c0_70 = arith.constant 0 : index
      %99 = vector.load %arg9[%c0_69, %c0_70] : memref<32x3xf32, #tpu.memory_space<vmem>>, vector<32x3xf32>
      %cst_71 = arith.constant 0.899999976 : f32
      %100 = vector.broadcast %cst_71 : f32 to vector<32x3xf32>
      %101 = arith.mulf %100, %99 : vector<32x3xf32>
      %cst_72 = arith.constant 1.000000e-01 : f32
      %102 = vector.broadcast %cst_72 : f32 to vector<32x3xf32>
      %103 = arith.mulf %102, %96 : vector<32x3xf32>
      %104 = arith.addf %101, %103 : vector<32x3xf32>
      %c0_73 = arith.constant 0 : index
      %c0_74 = arith.constant 0 : index
      %105 = vector.load %arg10[%c0_73, %c0_74] : memref<32x3xf32, #tpu.memory_space<vmem>>, vector<32x3xf32>
      %cst_75 = arith.constant 9.990000e-01 : f32
      %106 = vector.broadcast %cst_75 : f32 to vector<32x3xf32>
      %107 = arith.mulf %106, %105 : vector<32x3xf32>
      %108 = arith.mulf %96, %96 : vector<32x3xf32>
      %cst_76 = arith.constant 1.000000e-03 : f32
      %109 = vector.broadcast %cst_76 : f32 to vector<32x3xf32>
      %110 = arith.mulf %109, %108 : vector<32x3xf32>
      %111 = arith.addf %107, %110 : vector<32x3xf32>
      %cst_77 = arith.constant 1.000000e+00 : f32
      %112 = arith.subf %cst_77, %97 : f32
      %cst_78 = arith.constant 1.000000e+00 : f32
      %113 = arith.divf %cst_78, %112 : f32
      %114 = vector.broadcast %113 : f32 to vector<32x3xf32>
      %115 = arith.mulf %104, %114 : vector<32x3xf32>
      %cst_79 = arith.constant 1.000000e+00 : f32
      %116 = arith.subf %cst_79, %98 : f32
      %cst_80 = arith.constant 1.000000e+00 : f32
      %117 = arith.divf %cst_80, %116 : f32
      %118 = vector.broadcast %117 : f32 to vector<32x3xf32>
      %119 = arith.mulf %111, %118 : vector<32x3xf32>
      %cst_81 = arith.constant 5.000000e-04 : f32
      %120 = vector.broadcast %cst_81 : f32 to vector<32x3xf32>
      %121 = arith.mulf %120, %115 : vector<32x3xf32>
      %122 = math.sqrt %119 : vector<32x3xf32>
      %cst_82 = arith.constant 9.99999993E-9 : f32
      %123 = vector.broadcast %cst_82 : f32 to vector<32x3xf32>
      %124 = arith.addf %122, %123 : vector<32x3xf32>
      %125 = arith.divf %121, %124 : vector<32x3xf32>
      %126 = arith.subf %74, %125 : vector<32x3xf32>
      %c0_83 = arith.constant 0 : index
      %c0_84 = arith.constant 0 : index
      %127 = vector.load %arg8[%c0_83, %c0_84] : memref<32x3xf32, #tpu.memory_space<vmem>>, vector<32x3xf32>
      tpu.vector_store %arg8[%c0_83, %c0_84], %126 {strides = array<i32>} : memref<32x3xf32, #tpu.memory_space<vmem>>, vector<32x3xf32>,
      %c0_85 = arith.constant 0 : index
      %c0_86 = arith.constant 0 : index
      %128 = vector.load %arg9[%c0_85, %c0_86] : memref<32x3xf32, #tpu.memory_space<vmem>>, vector<32x3xf32>
      tpu.vector_store %arg9[%c0_85, %c0_86], %104 {strides = array<i32>} : memref<32x3xf32, #tpu.memory_space<vmem>>, vector<32x3xf32>,
      %c0_87 = arith.constant 0 : index
      %c0_88 = arith.constant 0 : index
      %129 = vector.load %arg10[%c0_87, %c0_88] : memref<32x3xf32, #tpu.memory_space<vmem>>, vector<32x3xf32>
      tpu.vector_store %arg10[%c0_87, %c0_88], %111 {strides = array<i32>} : memref<32x3xf32, #tpu.memory_space<vmem>>, vector<32x3xf32>,
      scf.yield %97, %98 : f32, f32
    }
    %c32_i32_35 = arith.constant 32 : i32
    %c0_36 = arith.constant 0 : index
    %c0_37 = arith.constant 0 : index
    %51 = vector.load %arg8[%c0_36, %c0_37] : memref<32x3xf32, #tpu.memory_space<vmem>>, vector<32x3xf32>
    %c0_38 = arith.constant 0 : index
    %c0_39 = arith.constant 0 : index
    %c0_40 = arith.constant 0 : index
    %52 = vector.load %arg6[%c0_38, %c0_39, %c0_40] : memref<1x32x3xf32, #tpu.memory_space<vmem>>, vector<1x32x3xf32>
    %53 = vector.shape_cast %52 : vector<1x32x3xf32> to vector<32x3xf32>
    %54 = vector.shape_cast %51 : vector<32x3xf32> to vector<1x32x3xf32>
    tpu.vector_store %arg6[%c0_38, %c0_39, %c0_40], %54 {strides = array<i32>} : memref<1x32x3xf32, #tpu.memory_space<vmem>>, vector<1x32x3xf32>,
    return
  }
  func.func @transform_0(%arg0: i32) -> (i32, i32, i32, i32) {
    %c0_i32 = arith.constant 0 : i32
    %c0_i32_0 = arith.constant 0 : i32
    %c0_i32_1 = arith.constant 0 : i32
    %c0_i32_2 = arith.constant 0 : i32
    return %arg0, %c0_i32, %c0_i32_0, %c0_i32_1 : i32, i32, i32, i32
  }
  func.func @transform_1(%arg0: i32) -> (i32, i32, i32, i32) {
    %c0_i32 = arith.constant 0 : i32
    %c0_i32_0 = arith.constant 0 : i32
    %c0_i32_1 = arith.constant 0 : i32
    %c0_i32_2 = arith.constant 0 : i32
    return %arg0, %c0_i32, %c0_i32_0, %c0_i32_1 : i32, i32, i32, i32
  }
  func.func @transform_2(%arg0: i32) -> (i32, i32, i32, i32) {
    %c0_i32 = arith.constant 0 : i32
    %c0_i32_0 = arith.constant 0 : i32
    %c0_i32_1 = arith.constant 0 : i32
    %c0_i32_2 = arith.constant 0 : i32
    return %arg0, %c0_i32, %c0_i32_0, %c0_i32_1 : i32, i32, i32, i32
  }
  func.func @transform_3(%arg0: i32) -> (i32, i32) {
    %c0_i32 = arith.constant 0 : i32
    %c0_i32_0 = arith.constant 0 : i32
    %c0_i32_1 = arith.constant 0 : i32
    return %c0_i32, %c0_i32_0 : i32, i32
  }
  func.func @transform_4(%arg0: i32) -> (i32, i32) {
    %c0_i32 = arith.constant 0 : i32
    %c0_i32_0 = arith.constant 0 : i32
    %c0_i32_1 = arith.constant 0 : i32
    return %c0_i32, %c0_i32_0 : i32, i32
  }
  func.func @transform_5(%arg0: i32) -> (i32, i32, i32) {
    %c0_i32 = arith.constant 0 : i32
    %c0_i32_0 = arith.constant 0 : i32
    %c0_i32_1 = arith.constant 0 : i32
    return %arg0, %c0_i32, %c0_i32_0 : i32, i32, i32
  }
  func.func @transform_6(%arg0: i32) -> (i32, i32, i32) {
    %c0_i32 = arith.constant 0 : i32
    %c0_i32_0 = arith.constant 0 : i32
    %c0_i32_1 = arith.constant 0 : i32
    return %arg0, %c0_i32, %c0_i32_0 : i32, i32, i32
  }
}

</mosaic_0001>

<bundles_post_ra>
// kernel: _forward.1
= control target key start
LH: loop header
LB: loop body
LE: loop exit
PB: predicated region body
PF: predicated region fallthrough
CT: control target
= control target key end

     0   :  { %s4295_s0 = inlined_call_operand.vmem [shape: f32[2,2,128,32], index: 0, kind: input, shape index: {}]   ;;  %s4296_s1 = inlined_call_operand.vmem [shape: f32[2,2,128,3], index: 1, kind: input, shape index: {}]   ;;  %s4297_s2 = inlined_call_operand.vmem [shape: f32[2,2,128,1], index: 2, kind: input, shape index: {}]   ;;  %s4298_s3 = inlined_call_operand.vmem [shape: f32[32,3], index: 3, kind: input, shape index: {}]   ;;  %s4299_s4 = inlined_call_operand.vmem [shape: f32[32,9], index: 4, kind: input, shape index: {}]   ;;  %s4300_s5 = inlined_call_operand.vmem [shape: f32[2,32,3], index: 5, kind: output, shape index: {0}]   ;;  %s4301_s6 = inlined_call_operand.vmem [shape: f32[2,1,4], index: 6, kind: output, shape index: {1}]  }
   0x1   :  { %4303 = sst [smem:[#allocation8_spill]] %s4295_s0 }
   0x2   :  { %4304 = sst [smem:[#allocation9_spill]] %s4298_s3 }
   0x3   :  { %12 = vsyncpa [#allocation6], 0 }
   0x4   :  { %14 = vsyncpa [#allocation6 + $0x1], 0  ;;  %s2838_s21 = smov 0   ;;  %s2840_s22 = smov 0  }
   0x5   :  { %s2842_s23 = smov 0   ;;  %s2844_s24 = smov 0  }
   0x6 LB: > { %s2859_s25 = sadd.s32 4294967295, %s2783_s24   ;;  %s2374_s26 = sadd.s32 4294967294, %s2783_s24   ;;  %s2783_s24 = sphi %s2844_s24, %s4319_s24   ;;  %s2779_s23 = sphi %s2842_s23, %s4318_s23   ;;  %s2775_s22 = sphi %s2840_s22, %s4317_s22   ;;  %s2771_s21 = sphi %s2838_s21, %s4316_s21  }
   0x7   : > { %s2863_s27 = sadd.s32 1, %s2783_s24   ;;  %s173_s28 = sadd.s32 1, %s2779_s23 }
   0x8   : > { %s170_s29 = ssub.s32 %s2783_s24, %s2863_s27  ;;  %p183_p0 = scmp.ne.s32.totalorder %s2779_s23, %s2775_s22 }
   0x9   : > { %p171_p1 = scmp.eq.s32.totalorder %s170_s29, 0  ;;  %p184_p2 = scmp.eq.s32.totalorder %s2859_s25, 1 }
   0xa   : > { %p189_p3 = scmp.ne.s32.totalorder %s2775_s22, %s2771_s21  ;;  %p190_p4 = scmp.eq.s32.totalorder %s2374_s26, 1 }
   0xb   : > { %s2874_s30 = scalar_select %p171_p1, %s2779_s23, %s173_s28  }
   0xc   : > { %p2876_p5 = por %p184_p2, %p183_p0  ;;  %p2880_p6 = por %p190_p4, %p189_p3 }
   0xd   : > { %p2377_p7 = scmp.ge.s32.totalorder %s2783_s24, 1  ;;  %p238_p8 = scmp.lt.s32.totalorder %s2783_s24, 3 }
   0xf   : > { %p239_p9 = pnand %p2377_p7, %p238_p8 }
  0x10   : > { %p283_p10 = scmp.lt.s32.totalorder (!%p239_p9), %s2859_s25, 1  ;;  %s4307_s0 = sld [smem:[#allocation8_spill]] (!%p239_p9) }
  0x11   : > { %242 = sbr.rel (%p239_p9) target bundleno = 1413 (0x585), region = 40  ;;  %s4308_s3 = sld [smem:[#allocation9_spill]] (!%p239_p9) }
  0x12   : > { %s2798_s14 = smov (!%p239_p9), 122   ;;  %s2799_s15 = smov (!%p239_p9), 125  }
  0x16   : > { %v340_v0 = vld [vmem:[%s4299_s4 + $0x18] sm:$0xff]  ;;  %v339_v1 = vld [vmem:[%s4299_s4 + $0x10] sm:$0xff]  ;;  %s284_s13 = scalar_select %p283_p10, %s2859_s25, 1  ;;  %v338_v2 = vld [vmem:[%s4299_s4 + $0x8] sm:$0xff]  ;;  %vm341_vm0 = vcmask 261120   ;;  %vm307_vm1 = vcmask 23552  }
  0x17   : > { %402 = vmatpush.msra.mxu0 %v340_v0  ;;  %2478 = vmatpush.msra.mxu1 %v340_v0  ;;  %v337_v3 = vld [vmem:[%s4299_s4] sm:$0xff]  ;;  %v304_v16 = vld [vmem:[%s4308_s3 + $0x8] sm:$0xff]  ;;  %v305_v17 = vld [vmem:[%s4308_s3 + $0x10] sm:$0xff]  ;;  %v2797_v19 = vmov 0.0   ;;  %vm1303_vm6 = vcmask 7168  }
  0x18   : > { %2479 = vmatpush.msra.mxu2 %v340_v0  ;;  %2480 = vmatpush.msra.mxu3 %v340_v0  ;;  %s2897_s16 = sshll.u32 %s284_s13, 8  ;;  %s2477_s17 = sshll.u32 %s284_s13, 5  ;;  %v303_v15 = vld [vmem:[%s4308_s3] sm:$0xff]  ;;  %v306_v18 = vld [vmem:[%s4308_s3 + $0x18] sm:$0xff]  ;;  %309 = vst.msk [vmem:[#allocation2 + $0x8] sm:$0xff] %vm307_vm1, %v304_v16 }
  0x19   : > { %403 = vmatpush.msra.mxu0 %v339_v1  ;;  %2481 = vmatpush.msra.mxu1 %v339_v1  ;;  %s2906_s28 = scalar_lea.vmem %s4307_s0, %s2897_s16  ;;  %s2919_s18 = scalar_lea.vmem %s4300_s5, %s2477_s17  ;;  %308 = vst.msk [vmem:[#allocation2] sm:$0xff] %vm307_vm1, %v303_v15 }
  0x1a   : > { %2482 = vmatpush.msra.mxu2 %v339_v1  ;;  %2483 = vmatpush.msra.mxu3 %v339_v1  ;;  %v2387_v4 = vld [vmem:[%s2906_s28 + $0x80] sm:$0xff]  ;;  %v2392_v8 = vld [vmem:[%s2906_s28 + $0xa8] sm:$0xff]  ;;  %v2389_v12 = vld [vmem:[%s2906_s28 + $0x90] sm:$0xff]  ;;  %310 = vst.msk [vmem:[#allocation2 + $0x10] sm:$0xff] %vm307_vm1, %v305_v17  ;;  %s4302_s17 = sand.u32 1, %s2775_s22   ;;  %s3857_s0 = smov 1.0  }
  0x1b   : > { %404 = vmatpush.msra.mxu0 %v338_v2  ;;  %2484 = vmatpush.msra.mxu1 %v338_v2  ;;  %v2391_v5 = vld [vmem:[%s2906_s28 + $0xa0] sm:$0xff]  ;;  %v2388_v9 = vld [vmem:[%s2906_s28 + $0x88] sm:$0xff]  ;;  %v2393_v13 = vld [vmem:[%s2906_s28 + $0xb0] sm:$0xff]  ;;  %311 = vst.msk [vmem:[#allocation2 + $0x18] sm:$0xff] %vm307_vm1, %v306_v18  ;;  %s2378_s19 = sshll.u32 %s4302_s17, 7  ;;  %s3859_s17 = smov 1.0  }
  0x1c   : > { %2485 = vmatpush.msra.mxu2 %v338_v2  ;;  %2486 = vmatpush.msra.mxu3 %v338_v2  ;;  %v2395_v6 = vld [vmem:[%s2906_s28 + $0xc0] sm:$0xff]  ;;  %v2396_v10 = vld [vmem:[%s2906_s28 + $0xc8] sm:$0xff]  ;;  %v2401_v14 = vld [vmem:[%s2906_s28 + $0xf0] sm:$0xff]  ;;  %312 = vst.msk [vmem:[#allocation3] sm:$0xff] %vm307_vm1, %v2797_v19  ;;  %s3852_s29 = scalar_lea.smem [#allocation5], %s2378_s19  ;;  %s3861_s3 = smov 0  }
  0x1d   : > { %405 = vmatpush.msra.mxu0 %v337_v3  ;;  %2487 = vmatpush.msra.mxu1 %v337_v3  ;;  %v2399_v7 = vld [vmem:[%s2906_s28 + $0xe0] sm:$0xff]  ;;  %v2400_v11 = vld [vmem:[%s2906_s28 + $0xe8] sm:$0xff]  ;;  %313 = vst.msk [vmem:[#allocation3 + $0x8] sm:$0xff] %vm307_vm1, %v2797_v19  ;;  %v2397_v20 = vld [vmem:[%s2906_s28 + $0xd0] sm:$0xff]  ;;  %s1436_s9 = scalar_lea.smem %s3852_s29, 1 [#allocation5]  ;;  %s1519_s10 = scalar_lea.smem %s3852_s29, 2 [#allocation5] }
  0x1e   : > { %2403 = vmatmul.msk.f32.vlgmr.msra.gmra.mxu0 %vm341_vm0, %v2387_v4  ;;  %2407 = vmatmul.msk.f32.vlgmr.msra.gmra.mxu1 %vm341_vm0, %v2391_v5  ;;  %314 = vst.msk [vmem:[#allocation3 + $0x10] sm:$0xff] %vm307_vm1, %v2797_v19  ;;  %v2390_v30 = vld [vmem:[%s2906_s28 + $0x98] sm:$0xff] }
  0x1f   : > { %2488 = vmatpush.msra.mxu2 %v337_v3  ;;  %2489 = vmatpush.msra.mxu3 %v337_v3  ;;  %315 = vst.msk [vmem:[#allocation3 + $0x18] sm:$0xff] %vm307_vm1, %v2797_v19  ;;  %v2394_v41 = vld [vmem:[%s2906_s28 + $0xb8] sm:$0xff] }
  0x20   : > { %2411 = vmatmul.msk.f32.vlgmr.msra.gmra.mxu2 %vm341_vm0, %v2395_v6  ;;  %2415 = vmatmul.msk.f32.vlgmr.msra.gmra.mxu3 %vm341_vm0, %v2399_v7  ;;  %316 = vst.msk [vmem:[#allocation4] sm:$0xff] %vm307_vm1, %v2797_v19  ;;  %v2402_v42 = vld [vmem:[%s2906_s28 + $0xf8] sm:$0xff] }
  0x21   : > { %317 = vst.msk [vmem:[#allocation4 + $0x8] sm:$0xff] %vm307_vm1, %v2797_v19  ;;  %v2398_v44 = vld [vmem:[%s2906_s28 + $0xd8] sm:$0xff] }
  0x22   : > { %318 = vst.msk [vmem:[#allocation4 + $0x10] sm:$0xff] %vm307_vm1, %v2797_v19 }
  0x23   : > { %319 = vst.msk [vmem:[#allocation4 + $0x18] sm:$0xff] %vm307_vm1, %v2797_v19 }
  0x26   : > { %2408 = vmatmul.msk.f32.gmra.mxu1 %vm341_vm0, %v2392_v8  ;;  %2404 = vmatmul.msk.f32.gmra.mxu0 %vm341_vm0, %v2388_v9 }
  0x28   : > { %2412 = vmatmul.msk.f32.gmra.mxu2 %vm341_vm0, %v2396_v10  ;;  %2416 = vmatmul.msk.f32.gmra.mxu3 %vm341_vm0, %v2400_v11 }
  0x2e   : > { %2405 = vmatmul.msk.f32.gmra.mxu0 %vm341_vm0, %v2389_v12  ;;  %2409 = vmatmul.msk.f32.gmra.mxu1 %vm341_vm0, %v2393_v13 }
  0x30   : > { %2417 = vmatmul.msk.f32.gmra.mxu3 %vm341_vm0, %v2401_v14  ;;  %2413 = vmatmul.msk.f32.gmra.mxu2 %vm341_vm0, %v2397_v20 }
  0x36   : > { %2406 = vmatmul.msk.f32.gmra.mxu0 %vm341_vm0, %v2390_v30  ;;  %2410 = vmatmul.msk.f32.gmra.mxu1 %vm341_vm0, %v2394_v41 }
  0x38   : > { %2418 = vmatmul.msk.f32.gmra.mxu3 %vm341_vm0, %v2402_v42  ;;  %2414 = vmatmul.msk.f32.gmra.mxu2 %vm341_vm0, %v2398_v44 }
  0x9b   : > { %v407_v21 = vpop.f32.mrf.mxu0  ;;  %v419_v22 = vpop.f32.mrf.mxu1 }
  0x9c   : > { %v455_v23 = vmul.f32 %v407_v21, %v407_v21  ;;  %v459_v24 = vmul.f32 %v419_v22, %v419_v22 }
  0x9e   : > { %1023 = vrot.lane.b32.xlu2 %v459_v24, %s2798_s14  ;;  %1015 = vrot.lane.b32.xlu0 %v455_v23, %s2798_s14  ;;  %v483_v37 = vsel %vm307_vm1, %v459_v24, 0.0  ;;  %v471_v40 = vsel %vm307_vm1, %v455_v23, 0.0 }
  0x9f   : > { %727 = vrot.lane.b32.xlu1 %v455_v23, %s2799_s15 }
  0xa3   : > { %v431_v25 = vpop.f32.mrf.mxu2  ;;  %v443_v27 = vpop.f32.mrf.mxu3 }
  0xa4   : > { %v463_v26 = vmul.f32 %v431_v25, %v431_v25  ;;  %v467_v28 = vmul.f32 %v443_v27, %v443_v27  ;;  %v422_v29 = vpop.f32.mrf.mxu1  ;;  %v410_v32 = vpop.f32.mrf.mxu0 }
  0xa5   : > { %v460_v31 = vmul.f32 %v422_v29, %v422_v29  ;;  %v456_v50 = vmul.f32 %v410_v32, %v410_v32 }
  0xa6   : > { %735 = vrot.lane.b32.xlu0 %v459_v24, %s2799_s15  ;;  %v495_v46 = vsel %vm307_vm1, %v463_v26, 0.0  ;;  %v507_v48 = vsel %vm307_vm1, %v467_v28, 0.0 }
  0xa7   : > { %743 = vrot.lane.b32.xlu1 %v463_v26, %s2799_s15  ;;  %v474_v54 = vsel %vm307_vm1, %v456_v50, 0.0  ;;  %v486_v56 = vsel %vm307_vm1, %v460_v31, 0.0 }
  0xab   : > { %v434_v33 = vpop.f32.mrf.mxu2  ;;  %v446_v45 = vpop.f32.mrf.mxu3 }
  0xac   : > { %v464_v34 = vmul.f32 %v434_v33, %v434_v33  ;;  %v413_v35 = vpop.f32.mrf.mxu0  ;;  %v425_v38 = vpop.f32.mrf.mxu1  ;;  %v3015_v58 = vmul.f32 %v446_v45, %v446_v45 }
  0xad   : > { %v2979_v36 = vmul.f32 %v413_v35, %v413_v35  ;;  %v2984_v39 = vmul.f32 %v425_v38, %v425_v38 }
  0xae   : > { %v498_v0 = vsel %vm307_vm1, %v464_v34, 0.0 }
  0xaf   : > { %1039 = vrot.lane.b32.xlu1 %v467_v28, %s2798_s14  ;;  %v477_v43 = vsel %vm307_vm1, %v2979_v36, 0.0  ;;  %v489_v32 = vsel %vm307_vm1, %v2984_v39, 0.0 }
  0xb3   : > { %v449_v47 = vpop.f32.mrf.mxu3  ;;  %v437_v51 = vpop.f32.mrf.mxu2 }
  0xb4   : > { %v3001_v49 = vmul.f32 %v449_v47, %v449_v47  ;;  %v3008_v52 = vmul.f32 %v437_v51, %v437_v51  ;;  %v416_v55 = vpop.f32.mrf.mxu0  ;;  %v428_v60 = vpop.f32.mrf.mxu1 }
  0xb5   : > { %v458_v57 = vmul.f32 %v416_v55, %v416_v55  ;;  %v3025_v61 = vmul.f32 %v428_v60, %v428_v60 }
  0xb6   : > { %v501_v53 = vsel %vm307_vm1, %v3008_v52, 0.0 }
  0xb7   : > { %737 = vrot.lane.b32.xlu1 %v460_v31, %s2799_s15  ;;  %v480_v59 = vsel %vm307_vm1, %v458_v57, 0.0  ;;  %v492_v62 = vsel %vm307_vm1, %v3025_v61, 0.0 }
  0xbb   : > { %v452_v3 = vpop.f32.mrf.mxu3  ;;  %v440_v6 = vpop.f32.mrf.mxu2 }
  0xbc   : > { %v3037_v4 = vmul.f32 %v452_v3, %v452_v3  ;;  %v3043_v8 = vmul.f32 %v440_v6, %v440_v6 }
  0xbe   : > { %v504_v25 = vsel %vm307_vm1, %v3043_v8, 0.0 }
  0xbf   : > { %1033 = vrot.lane.b32.xlu1 %v464_v34, %s2798_s14 }
  0xc7   : > { %731 = vrot.lane.b32.xlu1 %v2979_v36, %s2799_s15  ;;  %484 = vadd.xlane.f32.xlu2 %v483_v37 }
  0xcf   : > { %1027 = vrot.lane.b32.xlu1 %v2984_v39, %s2798_s14 }
  0xd0   : > { %472 = vadd.xlane.f32.xlu0 %v471_v40 }
  0xdf   : > { %751 = vrot.lane.b32.xlu2 %v467_v28, %s2799_s15 }
  0xe4   : > { %1031 = vrot.lane.b32.xlu0 %v463_v26, %s2798_s14 }
  0xf8   : > { %v3049_v10 = vpop.permute.xlu2 %1023 }
  0xf9   : > { %478 = vadd.xlane.f32.xlu1 %v477_v43 }
 0x108   : > { %496 = vadd.xlane.f32.xlu2 %v495_v46 }
 0x10e   : > { %508 = vadd.xlane.f32.xlu0 %v507_v48 }
 0x110   : > { %v1016_v1 = vpop.permute.xlu0 %1015 }
 0x111   : > { %v3031_v63 = vpop.permute.xlu1 %727 }
 0x112   : > { %755 = vrot.lane.b32.xlu1 %v3001_v49, %s2799_s15 }
 0x118   : > { %v3039_v5 = vpop.permute.xlu0 %735 }
 0x119   : > { %v744_v2 = vpop.permute.xlu1 %743 }
 0x120   : > { %729 = vrot.lane.b32.xlu2 %v456_v50, %s2799_s15 }
 0x121   : > { %v1040_v7 = vpop.permute.xlu1 %1039 }
 0x122   : > { %1025 = vrot.lane.b32.xlu0 %v460_v31, %s2798_s14  ;;  %v1099_v45 = vsel %vm307_vm1, %v1040_v7, 0.0 }
 0x128   : > { %1017 = vrot.lane.b32.xlu2 %v456_v50, %s2798_s14 }
 0x129   : > { %v3051_v11 = vpop.permute.xlu1 %737 }
 0x131   : > { %v3059_v14 = vpop.permute.xlu1 %1033 }
 0x132   : > { %v1090_v7 = vsel %vm307_vm1, %v3059_v14, 0.0 }
 0x139   : > { %v3067_v20 = vpop.permute.xlu1 %731 }
 0x13a   : > { %v3057_v13 = vpop.xlane.xlu2 %484  ;;  %v781_v14 = vsel %vm307_vm1, %v3067_v20, 0.0 }
 0x13b   : > { %vm574_vm9 = vcmp.eq.f32.partialorder %v3057_v13, inf  ;;  %vm576_vm13 = vcmp.eq.f32.partialorder %v3057_v13, 0.0 }
 0x13c   : > { %502 = vadd.xlane.f32.xlu1 %v501_v53 }
 0x141   : > { %v3073_v26 = vpop.permute.xlu1 %1027 }
 0x142   : > { %v3063_v16 = vpop.permute.xlu2 %751 }
 0x143   : > { %v473_v9 = vpop.xlane.xlu0 %472 }
 0x144   : > { %2596 = vrsqrt.f32 %v473_v9  ;;  %vm526_vm2 = vcmp.eq.f32.partialorder %v473_v9, inf  ;;  %v529_v43 = vand.u32 2147483648, %v473_v9  ;;  %vm528_vm3 = vcmp.eq.f32.partialorder %v473_v9, 0.0 }
 0x14a   : > { %v2597_v17 = vpop.eup %2596 }
 0x14b   : > { %v520_v18 = vmul.f32 %v2597_v17, %v473_v9 }
 0x14c   : > { %475 = vadd.xlane.f32.xlu0 %v474_v54 }
 0x14d   : > { %v521_v22 = vmul.f32 %v2597_v17, %v520_v18 }
 0x14f   : > { %v522_v23 = vmul.f32 0.5, %v521_v22 }
 0x151   : > { %487 = vadd.xlane.f32.xlu2 %v486_v56  ;;  %v523_v27 = vsub.f32 1.5, %v522_v23 }
 0x153   : > { %v524_v30 = vmul.f32 %v2597_v17, %v523_v27 }
 0x155   : > { %1021 = vrot.lane.b32.xlu1 %v458_v57, %s2798_s14  ;;  %v525_v35 = vmul.f32 %v524_v30, %v473_v9 }
 0x156   : > { %v3053_v12 = vpop.permute.xlu0 %1031 }
 0x157   : > { %v527_v41 = vsel %vm526_vm2, %v473_v9, %v525_v35 }
 0x158   : > { %v530_v46 = vsel %vm528_vm3, %v529_v43, %v527_v41 }
 0x159   : > { %v1304_v53 = vsel %vm1303_vm6, %v530_v46, 0.0 }
 0x160   : > { %753 = vrot.lane.b32.xlu0 %v3015_v58, %s2799_s15 }
 0x169   : > { %745 = vrot.lane.b32.xlu2 %v464_v34, %s2799_s15  ;;  %v799_v34 = vsel %vm307_vm1, %v744_v2, 0.0 }
 0x16c   : > { %v3078_v37 = vpop.xlane.xlu1 %478 }
 0x16d   : > { %vm550_vm7 = vcmp.eq.f32.partialorder %v3078_v37, inf  ;;  %vm552_vm8 = vcmp.eq.f32.partialorder %v3078_v37, 0.0 }
 0x171   : > { %1041 = vrot.lane.b32.xlu2 %v3015_v58, %s2798_s14 }
 0x179   : > { %739 = vrot.lane.b32.xlu2 %v2984_v39, %s2799_s15  ;;  %v1063_v39 = vsel %vm307_vm1, %v1016_v1, 0.0  ;;  %v790_v1 = vsel %vm307_vm1, %v3051_v11, 0.0 }
 0x17b   : > { %v3069_v21 = vpop.xlane.xlu2 %496 }
 0x17f   : > { %481 = vadd.xlane.f32.xlu1 %v480_v59 }
 0x181   : > { %1035 = vrot.lane.b32.xlu2 %v3008_v52, %s2798_s14  ;;  %v3061_v15 = vpop.xlane.xlu0 %508 }
 0x183   : > { %v730_v28 = vpop.permute.xlu2 %729 }
 0x184   : > { %v3084_v51 = vpop.permute.xlu1 %755  ;;  %v778_v59 = vsel %vm307_vm1, %v730_v28, 0.0 }
 0x187   : > { %493 = vadd.xlane.f32.xlu1 %v492_v62 }
 0x189   : > { %733 = vrot.lane.b32.xlu2 %v458_v57, %s2799_s15  ;;  %v787_v57 = vsel %vm307_vm1, %v3039_v5, 0.0 }
 0x18a   : > { %499 = vadd.xlane.f32.xlu0 %v498_v0  ;;  %v1087_v0 = vsel %vm307_vm1, %v3053_v12, 0.0 }
 0x18b   : > { %v3080_v40 = vpop.permute.xlu2 %1017 }
 0x191   : > { %1029 = vrot.lane.b32.xlu2 %v3025_v61, %s2798_s14 }
 0x194   : > { %v3065_v19 = vpop.permute.xlu0 %1025 }
 0x195   : > { %v1078_v6 = vsel %vm307_vm1, %v3065_v19, 0.0 }
 0x199   : > { %757 = vrot.lane.b32.xlu2 %v3037_v4, %s2799_s15 }
 0x19e   : > { %1019 = vrot.lane.b32.xlu0 %v2979_v36, %s2798_s14 }
 0x1a0   : > { %749 = vrot.lane.b32.xlu1 %v3043_v8, %s2799_s15 }
 0x1a8   : > { %1045 = vrot.lane.b32.xlu1 %v3037_v4, %s2798_s14 }
 0x1af   : > { %v3097_v60 = vpop.xlane.xlu1 %502 }
 0x1bf   : > { %v476_v24 = vpop.xlane.xlu0 %475 }
 0x1c0   : > { %2598 = vrsqrt.f32 %v476_v24  ;;  %vm538_vm4 = vcmp.eq.f32.partialorder %v476_v24, inf  ;;  %v541_v47 = vand.u32 2147483648, %v476_v24  ;;  %vm540_vm5 = vcmp.eq.f32.partialorder %v476_v24, 0.0 }
 0x1c1   : > { %2600 = vrsqrt.f32 %v3078_v37 }
 0x1c2   : > { %505 = vadd.xlane.f32.xlu2 %v504_v25  ;;  %2602 = vrsqrt.f32 %v3057_v13 }
 0x1c4   : > { %v3090_v56 = vpop.xlane.xlu2 %487 }
 0x1c5   : > { %2604 = vrsqrt.f32 %v3090_v56  ;;  %vm586_vm12 = vcmp.eq.f32.partialorder %v3090_v56, inf  ;;  %vm588_vm14 = vcmp.eq.f32.partialorder %v3090_v56, 0.0 }
 0x1c6   : > { %v2599_v29 = vpop.eup %2598 }
 0x1c7   : > { %v532_v31 = vmul.f32 %v2599_v29, %v476_v24  ;;  %v1022_v3 = vpop.permute.xlu1 %1021 }
 0x1c8   : > { %490 = vadd.xlane.f32.xlu0 %v489_v32 }
 0x1c9   : > { %v533_v33 = vmul.f32 %v2599_v29, %v532_v31 }
 0x1ca   : > { %800 = vadd.xlane.f32.xlu2 %v799_v34  ;;  %v1081_v34 = vsel %vm307_vm1, %v3073_v26, 0.0 }
 0x1cb   : > { %v534_v36 = vmul.f32 0.5, %v533_v33 }
 0x1cc   : > { %v3100_v62 = vpop.permute.xlu2 %745 }
 0x1cd   : > { %v535_v38 = vsub.f32 1.5, %v534_v36 }
 0x1cf   : > { %v536_v42 = vmul.f32 %v2599_v29, %v535_v38 }
 0x1d1   : > { %v537_v44 = vmul.f32 %v536_v42, %v476_v24 }
 0x1d2   : > { %1064 = vadd.xlane.f32.xlu1 %v1063_v39  ;;  %1100 = vadd.xlane.f32.xlu2 %v1099_v45  ;;  %v754_v22 = vpop.permute.xlu0 %753  ;;  %v1072_v39 = vsel %vm307_vm1, %v1022_v3, 0.0  ;;  %v589_v3 = vand.u32 2147483648, %v3090_v56 }
 0x1d3   : > { %v539_v48 = vsel %vm538_vm4, %v476_v24, %v537_v44  ;;  %v814_v19 = vsel %vm307_vm1, %v754_v22, 0.0  ;;  %v553_v44 = vand.u32 2147483648, %v3078_v37 }
 0x1d4   : > { %v542_v50 = vsel %vm540_vm5, %v541_v47, %v539_v48  ;;  %v3115_v9 = vpop.permute.xlu2 %1041  ;;  %vm622_vm5 = vcmp.eq.f32.partialorder %v3069_v21, inf }
 0x1d5   : > { %v1305_v54 = vsel %vm1303_vm6, %v542_v50, 0.0 }
 0x1d6   : > { %v3088_v55 = vadd.f32 %v1305_v54, %v1304_v53 }
 0x1da   : > { %788 = vadd.xlane.f32.xlu1 %v787_v57  ;;  %779 = vadd.xlane.f32.xlu2 %v778_v59 }
 0x1dc   : > { %747 = vrot.lane.b32.xlu0 %v3008_v52, %s2799_s15  ;;  %v2601_v52 = vpop.eup %2600  ;;  %v3124_v30 = vpop.permute.xlu2 %739 }
 0x1dd   : > { %v544_v2 = vmul.f32 %v2601_v52, %v3078_v37  ;;  %v2603_v5 = vpop.eup %2602 }
 0x1de   : > { %v2605_v11 = vpop.eup %2604  ;;  %v568_v12 = vmul.f32 %v2603_v5, %v3057_v13 }
 0x1df   : > { %v545_v17 = vmul.f32 %v2601_v52, %v544_v2  ;;  %v580_v18 = vmul.f32 %v2605_v11, %v3090_v56 }
 0x1e0   : > { %v569_v23 = vmul.f32 %v2603_v5, %v568_v12 }
 0x1e1   : > { %v546_v24 = vmul.f32 0.5, %v545_v17  ;;  %v581_v25 = vmul.f32 %v2605_v11, %v580_v18  ;;  %v817_v18 = vsel %vm307_vm1, %v3084_v51, 0.0 }
 0x1e2   : > { %1088 = vadd.xlane.f32.xlu1 %v1087_v0  ;;  %791 = vadd.xlane.f32.xlu2 %v790_v1  ;;  %v570_v28 = vmul.f32 0.5, %v569_v23  ;;  %v577_v0 = vand.u32 2147483648, %v3057_v13 }
 0x1e3   : > { %v547_v29 = vsub.f32 1.5, %v546_v24 }
 0x1e4   : > { %1043 = vrot.lane.b32.xlu0 %v3001_v49, %s2798_s14  ;;  %v571_v31 = vsub.f32 1.5, %v570_v28  ;;  %v3131_v41 = vpop.permute.xlu2 %1035 }
 0x1e5   : > { %v548_v32 = vmul.f32 %v2601_v52, %v547_v29  ;;  %v775_v29 = vsel %vm307_vm1, %v3031_v63, 0.0 }
 0x1e6   : > { %v572_v36 = vmul.f32 %v2603_v5, %v571_v31  ;;  %v1075_v31 = vsel %vm307_vm1, %v3049_v10, 0.0 }
 0x1e7   : > { %v549_v38 = vmul.f32 %v548_v32, %v3078_v37  ;;  %v811_v32 = vsel %vm307_vm1, %v3063_v16, 0.0 }
 0x1e8   : > { %v573_v45 = vmul.f32 %v572_v36, %v3057_v13 }
 0x1e9   : > { %v551_v26 = vsel %vm550_vm7, %v3078_v37, %v549_v38  ;;  %vm624_vm7 = vcmp.eq.f32.partialorder %v3069_v21, 0.0 }
 0x1ea   : > { %1079 = vadd.xlane.f32.xlu1 %v1078_v6  ;;  %1091 = vadd.xlane.f32.xlu2 %v1090_v7  ;;  %v554_v50 = vsel %vm552_vm8, %v553_v44, %v551_v26  ;;  %v575_v54 = vsel %vm574_vm9, %v3057_v13, %v573_v45 }
 0x1eb   : > { %v1307_v37 = vsel %vm1303_vm6, %v554_v50, 0.0  ;;  %v578_v2 = vsel %vm576_vm13, %v577_v0, %v575_v54 }
 0x1ec   : > { %741 = vrot.lane.b32.xlu0 %v3025_v61, %s2799_s15  ;;  %v582_v61 = vmul.f32 0.5, %v581_v25  ;;  %v3142_v59 = vpop.permute.xlu2 %733  ;;  %v1308_v5 = vadd.f32 %v1307_v37, %v3088_v55  ;;  %v1311_v22 = vsel %vm1303_vm6, %v578_v2, 0.0 }
 0x1ee   : > { %v583_v20 = vsub.f32 1.5, %v582_v61  ;;  %v516_v61 = vsel %vm307_vm1, %v3037_v4, 0.0  ;;  %v1066_v4 = vsel %vm307_vm1, %v3080_v40, 0.0  ;;  %v802_v40 = vsel %vm307_vm1, %v3100_v62, 0.0 }
 0x1ef   : > { %v793_v62 = vsel %vm307_vm1, %v3124_v30, 0.0 }
 0x1f0   : > { %v584_v43 = vmul.f32 %v2605_v11, %v583_v20 }
 0x1f2   : > { %815 = vadd.xlane.f32.xlu1 %v814_v19  ;;  %v482_v27 = vpop.xlane.xlu1 %481  ;;  %782 = vadd.xlane.f32.xlu2 %v781_v14  ;;  %v585_v47 = vmul.f32 %v584_v43, %v3090_v56 }
 0x1f3   : > { %2606 = vrsqrt.f32 %v482_v27  ;;  %vm562_vm10 = vcmp.eq.f32.partialorder %v482_v27, inf  ;;  %v565_v53 = vand.u32 2147483648, %v482_v27  ;;  %vm564_vm11 = vcmp.eq.f32.partialorder %v482_v27, 0.0 }
 0x1f4   : > { %1037 = vrot.lane.b32.xlu0 %v3043_v8, %s2798_s14  ;;  %v587_v1 = vsel %vm586_vm12, %v3090_v56, %v585_v47  ;;  %v3161_v24 = vpop.permute.xlu2 %1029  ;;  %vm648_vm12 = vcmp.eq.f32.partialorder %v3097_v60, 0.0 }
 0x1f5   : > { %v590_v13 = vsel %vm588_vm14, %v589_v3, %v587_v1  ;;  %vm670_vm14 = vcmp.eq.f32.partialorder %v3061_v15, inf }
 0x1f6   : > { %v1313_v55 = vsel %vm1303_vm6, %v590_v13, 0.0 }
 0x1f9   : > { %v2607_v33 = vpop.eup %2606 }
 0x1fa   : > { %v556_v35 = vmul.f32 %v2607_v33, %v482_v27  ;;  %1082 = vadd.xlane.f32.xlu2 %v1081_v34  ;;  %v3155_v12 = vpop.xlane.xlu1 %493 }
 0x1fb   : > { %2608 = vrsqrt.f32 %v3155_v12  ;;  %vm610_vm15 = vcmp.eq.f32.partialorder %v3155_v12, inf  ;;  %vm612_vm2 = vcmp.eq.f32.partialorder %v3155_v12, 0.0 }
 0x1fc   : > { %v557_v42 = vmul.f32 %v2607_v33, %v556_v35  ;;  %v758_v28 = vpop.permute.xlu2 %757  ;;  %2610 = vrsqrt.f32 %v3069_v21 }
 0x1fd   : > { %v3153_v11 = vpop.xlane.xlu0 %499  ;;  %v820_v51 = vsel %vm307_vm1, %v758_v28, 0.0 }
 0x1fe   : > { %v558_v8 = vmul.f32 0.5, %v557_v42  ;;  %2612 = vrsqrt.f32 %v3153_v11  ;;  %vm634_vm8 = vcmp.eq.f32.partialorder %v3153_v11, inf  ;;  %vm636_vm9 = vcmp.eq.f32.partialorder %v3153_v11, 0.0 }
 0x1ff   : > { %2614 = vrsqrt.f32 %v3097_v60 }
 0x200   : > { %v559_v46 = vsub.f32 1.5, %v558_v8 }
 0x202   : > { %v560_v48 = vmul.f32 %v2607_v33, %v559_v46  ;;  %1073 = vadd.xlane.f32.xlu2 %v1072_v39  ;;  %v2609_v33 = vpop.eup %2608 }
 0x203   : > { %v604_v63 = vmul.f32 %v2609_v33, %v3155_v12  ;;  %v2611_v10 = vpop.eup %2610 }
 0x204   : > { %v561_v57 = vmul.f32 %v560_v48, %v482_v27  ;;  %v2613_v35 = vpop.eup %2612  ;;  %v616_v16 = vmul.f32 %v2611_v10, %v3069_v21 }
 0x205   : > { %v605_v20 = vmul.f32 %v2609_v33, %v604_v63  ;;  %v628_v42 = vmul.f32 %v2613_v35, %v3153_v11  ;;  %v2615_v44 = vpop.eup %2614 }
 0x206   : > { %v563_v52 = vsel %vm562_vm10, %v482_v27, %v561_v57  ;;  %v617_v8 = vmul.f32 %v2611_v10, %v616_v16  ;;  %v640_v48 = vmul.f32 %v2615_v44, %v3097_v60  ;;  %vm646_vm10 = vcmp.eq.f32.partialorder %v3097_v60, inf }
 0x207   : > { %v566_v6 = vsel %vm564_vm11, %v565_v53, %v563_v52  ;;  %v606_v38 = vmul.f32 0.5, %v605_v20  ;;  %v629_v26 = vmul.f32 %v2613_v35, %v628_v42 }
 0x208   : > { %v1309_v7 = vsel %vm1303_vm6, %v566_v6, 0.0  ;;  %v618_v47 = vmul.f32 0.5, %v617_v8  ;;  %v641_v52 = vmul.f32 %v2615_v44, %v640_v48  ;;  %v625_v8 = vand.u32 2147483648, %v3069_v21 }
 0x209   : > { %v1310_v17 = vadd.f32 %v1309_v7, %v1308_v5  ;;  %v607_v45 = vsub.f32 1.5, %v606_v38  ;;  %v630_v57 = vmul.f32 0.5, %v629_v26  ;;  %v637_v48 = vand.u32 2147483648, %v3153_v11 }
 0x20a   : > { %818 = vadd.xlane.f32.xlu2 %v817_v18  ;;  %v619_v1 = vsub.f32 1.5, %v618_v47  ;;  %v642_v18 = vmul.f32 0.5, %v641_v52 }
 0x20b   : > { %v1312_v23 = vadd.f32 %v1311_v22, %v1310_v17  ;;  %v608_v54 = vmul.f32 %v2609_v33, %v607_v45  ;;  %v631_v6 = vsub.f32 1.5, %v630_v57  ;;  %v613_v22 = vand.u32 2147483648, %v3155_v12 }
 0x20c   : > { %v620_v17 = vmul.f32 %v2611_v10, %v619_v1 }
 0x20d   : > { %v3163_v56 = vadd.f32 %v1313_v55, %v1312_v23  ;;  %v609_v5 = vmul.f32 %v608_v54, %v3155_v12 }
 0x20e   : > { %v621_v28 = vmul.f32 %v620_v17, %v3069_v21 }
 0x20f   : > { %v611_v30 = vsel %vm610_vm15, %v3155_v12, %v609_v5  ;;  %vm672_vm15 = vcmp.eq.f32.partialorder %v3061_v15, 0.0 }
 0x210   : > { %v1020_v19 = vpop.permute.xlu0 %1019  ;;  %v623_v38 = vsel %vm622_vm5, %v3069_v21, %v621_v28 }
 0x211   : > { %v1069_v14 = vsel %vm307_vm1, %v1020_v19, 0.0 }
 0x212   : > { %v750_v25 = vpop.permute.xlu1 %749  ;;  %1070 = vadd.xlane.f32.xlu1 %v1069_v14  ;;  %v632_v14 = vmul.f32 %v2613_v35, %v631_v6  ;;  %v1084_v6 = vsel %vm307_vm1, %v3161_v24, 0.0 }
 0x213   : > { %v808_v27 = vsel %vm307_vm1, %v750_v25, 0.0 }
 0x214   : > { %809 = vadd.xlane.f32.xlu2 %v808_v27  ;;  %v1093_v27 = vsel %vm307_vm1, %v3131_v41, 0.0  ;;  %v633_v41 = vmul.f32 %v632_v14, %v3153_v11 }
 0x216   : > { %v635_v26 = vsel %vm634_vm8, %v3153_v11, %v633_v41 }
 0x21a   : > { %v3211_v12 = vpop.permute.xlu1 %1045 }
 0x21c   : > { %821 = vadd.xlane.f32.xlu2 %v820_v51  ;;  %v643_v51 = vsub.f32 1.5, %v642_v18 }
 0x21e   : > { %776 = vadd.xlane.f32.xlu0 %v775_v29 }
 0x224   : > { %517 = vadd.xlane.f32.xlu2 %v516_v61 }
 0x226   : > { %1076 = vadd.xlane.f32.xlu0 %v1075_v31  ;;  %v614_v31 = vsel %vm612_vm2, %v613_v22, %v611_v30 }
 0x227   : > { %v1317_v16 = vsel %vm1303_vm6, %v614_v31, 0.0 }
 0x22e   : > { %812 = vadd.xlane.f32.xlu0 %v811_v32 }
 0x235   : > { %v3180_v34 = vpop.xlane.xlu2 %505 }
 0x236   : > { %1067 = vadd.xlane.f32.xlu0 %v1066_v4  ;;  %2616 = vrsqrt.f32 %v3180_v34  ;;  %vm658_vm11 = vcmp.eq.f32.partialorder %v3180_v34, inf  ;;  %v661_v11 = vand.u32 2147483648, %v3180_v34  ;;  %vm660_vm13 = vcmp.eq.f32.partialorder %v3180_v34, 0.0 }
 0x23b   : > { %v491_v36 = vpop.xlane.xlu0 %490 }
 0x23c   : > { %2618 = vrsqrt.f32 %v491_v36  ;;  %v2617_v39 = vpop.eup %2616  ;;  %vm598_vm3 = vcmp.eq.f32.partialorder %v491_v36, inf  ;;  %v601_v29 = vand.u32 2147483648, %v491_v36  ;;  %vm600_vm4 = vcmp.eq.f32.partialorder %v491_v36, 0.0 }
 0x23d   : > { %v3188_v43 = vpop.xlane.xlu2 %800  ;;  %v652_v50 = vmul.f32 %v2617_v39, %v3180_v34  ;;  %2620 = vrsqrt.f32 %v3061_v15 }
 0x23e   : > { %803 = vadd.xlane.f32.xlu0 %v802_v40  ;;  %2622 = vrsqrt.f32 %v3188_v43  ;;  %vm926_vm2 = vcmp.eq.f32.partialorder %v3188_v43, inf }
 0x23f   : > { %v653_v2 = vmul.f32 %v2617_v39, %v652_v50  ;;  %v638_v50 = vsel %vm636_vm9, %v637_v48, %v635_v26 }
 0x241   : > { %v654_v23 = vmul.f32 0.5, %v653_v2  ;;  %v1321_v2 = vsel %vm1303_vm6, %v638_v50, 0.0 }
 0x242   : > { %v2619_v46 = vpop.eup %2618 }
 0x243   : > { %v592_v53 = vmul.f32 %v2619_v46, %v491_v36  ;;  %v3201_v13 = vpop.eup %2620  ;;  %v655_v32 = vsub.f32 1.5, %v654_v23 }
 0x244   : > { %v664_v19 = vmul.f32 %v3201_v13, %v3061_v15 }
 0x245   : > { %v593_v0 = vmul.f32 %v2619_v46, %v592_v53  ;;  %v3195_v37 = vpop.xlane.xlu2 %1100  ;;  %v656_v42 = vmul.f32 %v2617_v39, %v655_v32  ;;  %v626_v39 = vsel %vm624_vm7, %v625_v8, %v623_v38  ;;  %v3235_v54 = vpop.xlane.xlu1 %1064  ;;  %v510_v32 = vsel %vm307_vm1, %v3015_v58, 0.0 }
 0x246   : > { %794 = vadd.xlane.f32.xlu0 %v793_v62  ;;  %v665_v10 = vmul.f32 %v3201_v13, %v664_v19  ;;  %v1319_v57 = vsel %vm1303_vm6, %v626_v39, 0.0  ;;  %2624 = vrsqrt.f32 %v3235_v54  ;;  %v513_v58 = vsel %vm307_vm1, %v3001_v49, 0.0 }
 0x247   : > { %v594_v3 = vmul.f32 0.5, %v593_v0  ;;  %v657_v21 = vmul.f32 %v656_v42, %v3180_v34  ;;  %v649_v0 = vand.u32 2147483648, %v3097_v60  ;;  %vm1120_vm5 = vcmp.eq.f32.partialorder %v3235_v54, 0.0 }
 0x248   : > { %v666_v45 = vmul.f32 0.5, %v665_v10  ;;  %vm1262_vm7 = vcmp.eq.f32.partialorder %v3195_v37, inf }
 0x249   : > { %v595_v7 = vsub.f32 1.5, %v594_v3  ;;  %v659_v52 = vsel %vm658_vm11, %v3180_v34, %v657_v21  ;;  %vm1264_vm11 = vcmp.eq.f32.partialorder %v3195_v37, 0.0 }
 0x24a   : > { %v667_v53 = vsub.f32 1.5, %v666_v45  ;;  %v662_v17 = vsel %vm660_vm13, %v661_v11, %v659_v52 }
 0x24b   : > { %v596_v55 = vmul.f32 %v2619_v46, %v595_v7  ;;  %v784_v46 = vsel %vm307_vm1, %v3142_v59, 0.0  ;;  %v1325_v23 = vsel %vm1303_vm6, %v662_v17, 0.0 }
 0x24c   : > { %v668_v5 = vmul.f32 %v3201_v13, %v667_v53  ;;  %v1102_v13 = vsel %vm307_vm1, %v3115_v9, 0.0  ;;  %v2623_v9 = vpop.eup %2622 }
 0x24d   : > { %v597_v25 = vmul.f32 %v596_v55, %v491_v36  ;;  %v3213_v63 = vpop.xlane.xlu2 %779  ;;  %v3254_v30 = vpop.xlane.xlu1 %788 }
 0x24e   : > { %1094 = vadd.xlane.f32.xlu0 %v1093_v27  ;;  %v748_v61 = vpop.permute.xlu0 %747  ;;  %v669_v22 = vmul.f32 %v668_v5, %v3061_v15  ;;  %2626 = vrsqrt.f32 %v3254_v30  ;;  %vm878_vm8 = vcmp.eq.f32.partialorder %v3254_v30, inf  ;;  %vm880_vm9 = vcmp.eq.f32.partialorder %v3254_v30, 0.0 }
 0x24f   : > { %v599_v33 = vsel %vm598_vm3, %v491_v36, %v597_v25  ;;  %v805_v35 = vsel %vm307_vm1, %v748_v61, 0.0  ;;  %v644_v36 = vmul.f32 %v2615_v44, %v643_v51  ;;  %v673_v25 = vand.u32 2147483648, %v3061_v15 }
 0x250   : > { %v602_v4 = vsel %vm600_vm4, %v601_v29, %v599_v33  ;;  %806 = vadd.xlane.f32.xlu1 %v805_v35  ;;  %v671_v14 = vsel %vm670_vm14, %v3061_v15, %v669_v22  ;;  %v920_v33 = vmul.f32 %v2623_v9, %v3188_v43  ;;  %2628 = vrsqrt.f32 %v3213_v63 }
 0x251   : > { %v1315_v20 = vsel %vm1303_vm6, %v602_v4, 0.0  ;;  %v674_v27 = vsel %vm672_vm15, %v673_v25, %v671_v14  ;;  %v2625_v4 = vpop.eup %2624  ;;  %2630 = vrsqrt.f32 %v3195_v37  ;;  %vm928_vm3 = vcmp.eq.f32.partialorder %v3188_v43, 0.0 }
 0x252   : > { %v1316_v40 = vadd.f32 %v1315_v20, %v3163_v56  ;;  %v645_v56 = vmul.f32 %v644_v36, %v3097_v60  ;;  %v1327_v51 = vsel %vm1303_vm6, %v674_v27, 0.0  ;;  %v921_v41 = vmul.f32 %v2623_v9, %v920_v33 }
 0x253   : > { %v1112_v20 = vmul.f32 %v2625_v4, %v3235_v54  ;;  %vm1118_vm4 = vcmp.eq.f32.partialorder %v3235_v54, inf  ;;  %v1121_v27 = vand.u32 2147483648, %v3235_v54 }
 0x254   : > { %v1318_v47 = vadd.f32 %v1317_v16, %v1316_v40  ;;  %v647_v1 = vsel %vm646_vm10, %v3097_v60, %v645_v56  ;;  %v2627_v35 = vpop.eup %2626  ;;  %v922_v40 = vmul.f32 0.5, %v921_v41  ;;  %vm842_vm10 = vcmp.eq.f32.partialorder %v3213_v63, inf }
 0x255   : > { %v3237_v59 = vpop.xlane.xlu2 %791  ;;  %v650_v7 = vsel %vm648_vm12, %v649_v0, %v647_v1  ;;  %v3270_v61 = vpop.xlane.xlu1 %1088  ;;  %v1113_v8 = vmul.f32 %v2625_v4, %v1112_v20  ;;  %v872_v45 = vmul.f32 %v2627_v35, %v3254_v30  ;;  %vm844_vm12 = vcmp.eq.f32.partialorder %v3213_v63, 0.0 }
 0x256   : > { %v1044_v44 = vpop.permute.xlu0 %1043  ;;  %785 = vadd.xlane.f32.xlu0 %v784_v46  ;;  %v1320_v62 = vadd.f32 %v1319_v57, %v1318_v47  ;;  %v1323_v60 = vsel %vm1303_vm6, %v650_v7, 0.0  ;;  %v2629_v16 = vpop.eup %2628  ;;  %2632 = vrsqrt.f32 %v3270_v61  ;;  %v1108_v46 = vsel %vm307_vm1, %v3211_v12, 0.0 }
 0x257   : > { %v1105_v28 = vsel %vm307_vm1, %v1044_v44, 0.0  ;;  %v2631_v42 = vpop.eup %2630  ;;  %v836_v26 = vmul.f32 %v2629_v16, %v3213_v63  ;;  %v923_v47 = vsub.f32 1.5, %v922_v40  ;;  %v1114_v48 = vmul.f32 0.5, %v1113_v8 }
 0x258   : > { %v1322_v3 = vadd.f32 %v1321_v2, %v1320_v62  ;;  %v1256_v49 = vmul.f32 %v2631_v42, %v3195_v37  ;;  %v873_v44 = vmul.f32 %v2627_v35, %v872_v45  ;;  %2634 = vrsqrt.f32 %v3237_v59 }
 0x259   : > { %v837_v39 = vmul.f32 %v2629_v16, %v836_v26  ;;  %v924_v50 = vmul.f32 %v2623_v9, %v923_v47  ;;  %v1115_v53 = vsub.f32 1.5, %v1114_v48  ;;  %v881_v45 = vand.u32 2147483648, %v3254_v30 }
 0x25a   : > { %v1324_v55 = vadd.f32 %v1323_v60, %v1322_v3  ;;  %v1257_v21 = vmul.f32 %v2631_v42, %v1256_v49  ;;  %v874_v57 = vmul.f32 0.5, %v873_v44  ;;  %vm1214_vm13 = vcmp.eq.f32.partialorder %v3270_v61, inf }
 0x25b   : > { %v838_v0 = vmul.f32 0.5, %v837_v39  ;;  %v925_v2 = vmul.f32 %v924_v50, %v3188_v43  ;;  %v1116_v3 = vmul.f32 %v2625_v4, %v1115_v53  ;;  %vm1216_vm14 = vcmp.eq.f32.partialorder %v3270_v61, 0.0 }
 0x25c   : > { %v1326_v24 = vadd.f32 %v1325_v23, %v1324_v55  ;;  %v3295_v56 = vpop.eup %2632  ;;  %v1258_v52 = vmul.f32 0.5, %v1257_v21  ;;  %v875_v5 = vsub.f32 1.5, %v874_v57  ;;  %vm890_vm15 = vcmp.eq.f32.partialorder %v3237_v59, inf }
 0x25d   : > { %v3256_v19 = vpop.xlane.xlu2 %1091  ;;  %v3284_v38 = vpop.xlane.xlu1 %1079  ;;  %v1208_v1 = vmul.f32 %v3295_v56, %v3270_v61  ;;  %v839_v7 = vsub.f32 1.5, %v838_v0  ;;  %v927_v60 = vsel %vm926_vm2, %v3188_v43, %v925_v2  ;;  %v1117_v23 = vmul.f32 %v1116_v3, %v3235_v54 }
 0x25e   : > { %1085 = vadd.xlane.f32.xlu0 %v1084_v6  ;;  %v742_v18 = vpop.permute.xlu0 %741  ;;  %v3268_v29 = vadd.f32 %v1327_v51, %v1326_v24  ;;  %2636 = vrsqrt.f32 %v3284_v38  ;;  %v3302_v62 = vpop.eup %2634  ;;  %v1259_v22 = vsub.f32 1.5, %v1258_v52  ;;  %v929_v24 = vand.u32 2147483648, %v3188_v43 }
 0x25f   : > { %v796_v34 = vsel %vm307_vm1, %v742_v18, 0.0  ;;  %v884_v17 = vmul.f32 %v3302_v62, %v3237_v59  ;;  %v1209_v18 = vmul.f32 %v3295_v56, %v1208_v1  ;;  %v1265_v43 = vand.u32 2147483648, %v3195_v37 }
 0x260   : > { %797 = vadd.xlane.f32.xlu1 %v796_v34  ;;  %v876_v34 = vmul.f32 %v2627_v35, %v875_v5  ;;  %v930_v9 = vsel %vm928_vm3, %v929_v24, %v927_v60  ;;  %v1119_v33 = vsel %vm1118_vm4, %v3235_v54, %v1117_v23  ;;  %v845_v54 = vand.u32 2147483648, %v3213_v63 }
 0x261   : > { %v885_v14 = vmul.f32 %v3302_v62, %v884_v17  ;;  %v1122_v26 = vsel %vm1120_vm5, %v1121_v27, %v1119_v33  ;;  %v1217_v3 = vand.u32 2147483648, %v3270_v61  ;;  %vm892_vm2 = vcmp.eq.f32.partialorder %v3237_v59, 0.0 }
 0x262   : > { %v877_v4 = vmul.f32 %v876_v34, %v3254_v30  ;;  %v2435_v2 = vadd.f32 -1.0, %v1122_v26  ;;  %vm1178_vm3 = vcmp.eq.f32.partialorder %v3284_v38, inf  ;;  %vm1180_vm4 = vcmp.eq.f32.partialorder %v3284_v38, 0.0 }
 0x263   : > { %v886_v35 = vmul.f32 0.5, %v885_v14  ;;  %vm1226_vm5 = vcmp.eq.f32.partialorder %v3256_v19, inf }
 0x264   : > { %v3308_v6 = vpop.eup %2636  ;;  %v879_v47 = vsel %vm878_vm8, %v3254_v30, %v877_v4  ;;  %v1454_v24 = vmul.f32 %v2435_v2, %v2435_v2  ;;  %vm1228_vm8 = vcmp.eq.f32.partialorder %v3256_v19, 0.0 }
 0x265   : > { %v3272_v31 = vpop.xlane.xlu2 %782  ;;  %v3298_v11 = vpop.xlane.xlu1 %815  ;;  %v1172_v55 = vmul.f32 %v3308_v6, %v3284_v38  ;;  %v887_v44 = vsub.f32 1.5, %v886_v35 }
 0x266   : > { %1103 = vadd.xlane.f32.xlu0 %v1102_v13  ;;  %v1038_v15 = vpop.permute.xlu0 %1037  ;;  %2638 = vrsqrt.f32 %v3298_v11  ;;  %v840_v13 = vmul.f32 %v2629_v16, %v839_v7  ;;  %v2427_v16 = vadd.f32 -1.0, %v930_v9  ;;  %v882_v7 = vsel %vm880_vm9, %v881_v45, %v879_v47 }
 0x267   : > { %v1096_v10 = vsel %vm307_vm1, %v1038_v15, 0.0  ;;  %2640 = vrsqrt.f32 %v3256_v19  ;;  %vm856_vm9 = vcmp.eq.f32.partialorder %v3272_v31, 0.0 }
 0x268   : > { %1106 = vadd.xlane.f32.xlu1 %v1105_v28  ;;  %2642 = vrsqrt.f32 %v3272_v31  ;;  %v1210_v28 = vmul.f32 0.5, %v1209_v18  ;;  %v841_v20 = vmul.f32 %v840_v13, %v3213_v63  ;;  %v1379_v1 = vmul.f32 %v2427_v16, %v2427_v16 }
 0x269   : > { %v2423_v13 = vadd.f32 -1.0, %v882_v7 }
 0x26a   : > { %v843_v48 = vsel %vm842_vm10, %v3213_v63, %v841_v20  ;;  %v3395_v14 = vsel %vm1303_vm6, %v1379_v1, 0.0  ;;  %vm986_vm10 = vcmp.eq.f32.partialorder %v3298_v11, inf }
 0x26b   : > { %v1375_v16 = vmul.f32 %v2423_v13, %v2423_v13 }
 0x26c   : > { %v3323_v25 = vpop.eup %2638 }
 0x26d   : > { %v3286_v36 = vpop.xlane.xlu2 %1082  ;;  %v3328_v51 = vpop.eup %2640 }
 0x26e   : > { %511 = vadd.xlane.f32.xlu0 %v510_v32  ;;  %v1260_v32 = vmul.f32 %v2631_v42, %v1259_v22  ;;  %2644 = vrsqrt.f32 %v3286_v36  ;;  %v3338_v41 = vpop.eup %2642  ;;  %v1211_v42 = vsub.f32 1.5, %v1210_v28  ;;  %v1220_v40 = vmul.f32 %v3328_v51, %v3256_v19 }
 0x26f   : > { %v848_v49 = vmul.f32 %v3338_v41, %v3272_v31  ;;  %v888_v22 = vmul.f32 %v3302_v62, %v887_v44  ;;  %v893_v62 = vand.u32 2147483648, %v3237_v59 }
 0x270   : > { %1097 = vadd.xlane.f32.xlu1 %v1096_v10  ;;  %v1173_v10 = vmul.f32 %v3308_v6, %v1172_v55  ;;  %v1261_v8 = vmul.f32 %v1260_v32, %v3195_v37  ;;  %v1212_v53 = vmul.f32 %v3295_v56, %v1211_v42  ;;  %v1221_v57 = vmul.f32 %v3328_v51, %v1220_v40 }
 0x271   : > { %v846_v56 = vsel %vm844_vm12, %v845_v54, %v843_v48  ;;  %v849_v18 = vmul.f32 %v3338_v41, %v848_v49  ;;  %v889_v33 = vmul.f32 %v888_v22, %v3237_v59  ;;  %v1181_v42 = vand.u32 2147483648, %v3284_v38 }
 0x272   : > { %v1263_v5 = vsel %vm1262_vm7, %v3195_v37, %v1261_v8  ;;  %v1213_v30 = vmul.f32 %v1212_v53, %v3270_v61  ;;  %v1222_v63 = vmul.f32 0.5, %v1221_v57  ;;  %v2420_v27 = vadd.f32 -1.0, %v846_v56 }
 0x273   : > { %v850_v9 = vmul.f32 0.5, %v849_v18  ;;  %v1266_v32 = vsel %vm1264_vm11, %v1265_v43, %v1263_v5  ;;  %v3415_v43 = vsel %vm1303_vm6, %v1454_v24, 0.0  ;;  %v1229_v54 = vand.u32 2147483648, %v3256_v19 }
 0x274   : > { %v3362_v50 = vpop.eup %2644  ;;  %v1215_v35 = vsel %vm1214_vm13, %v3270_v61, %v1213_v30  ;;  %v1372_v40 = vmul.f32 %v2420_v27, %v2420_v27  ;;  %v3433_v61 = vsel %vm1303_vm6, %v1375_v16, 0.0  ;;  %vm854_vm7 = vcmp.eq.f32.partialorder %v3272_v31, inf }
 0x275   : > { %v3300_v12 = vpop.xlane.xlu2 %1073  ;;  %v1184_v23 = vmul.f32 %v3362_v50, %v3286_v36  ;;  %v851_v45 = vsub.f32 1.5, %v850_v9  ;;  %v1218_v26 = vsel %vm1216_vm14, %v1217_v3, %v1215_v35  ;;  %v2447_v57 = vadd.f32 -1.0, %v1266_v32 }
 0x276   : > { %514 = vadd.xlane.f32.xlu0 %v513_v58  ;;  %v980_v58 = vmul.f32 %v3323_v25, %v3298_v11  ;;  %2646 = vrsqrt.f32 %v3300_v12  ;;  %v3449_v5 = vsel %vm1303_vm6, %v1372_v40, 0.0  ;;  %v857_v56 = vand.u32 2147483648, %v3272_v31 }
 0x277   : > { %v852_v2 = vmul.f32 %v3338_v41, %v851_v45  ;;  %vm988_vm11 = vcmp.eq.f32.partialorder %v3298_v11, 0.0  ;;  %v1466_v27 = vmul.f32 %v2447_v57, %v2447_v57  ;;  %vm1190_vm12 = vcmp.eq.f32.partialorder %v3286_v36, inf }
 0x278   : > { %1109 = vadd.xlane.f32.xlu1 %v1108_v46  ;;  %v1174_v46 = vmul.f32 0.5, %v1173_v10  ;;  %v981_v39 = vmul.f32 %v3323_v25, %v980_v58  ;;  %v1185_v10 = vmul.f32 %v3362_v50, %v1184_v23  ;;  %vm1192_vm13 = vcmp.eq.f32.partialorder %v3286_v36, 0.0 }
 0x279   : > { %v853_v24 = vmul.f32 %v852_v2, %v3272_v31  ;;  %vm1154_vm14 = vcmp.eq.f32.partialorder %v3300_v12, inf }
 0x27a   : > { %v1175_v17 = vsub.f32 1.5, %v1174_v46  ;;  %v982_v60 = vmul.f32 0.5, %v981_v39  ;;  %v891_v46 = vsel %vm890_vm15, %v3237_v59, %v889_v33  ;;  %v1186_v47 = vmul.f32 0.5, %v1185_v10 }
 0x27b   : > { %vm1156_vm15 = vcmp.eq.f32.partialorder %v3300_v12, 0.0 }
 0x27c   : > { %v3369_v52 = vpop.eup %2646  ;;  %v1176_v28 = vmul.f32 %v3308_v6, %v1175_v17  ;;  %v983_v4 = vsub.f32 1.5, %v982_v60  ;;  %v1223_v6 = vsub.f32 1.5, %v1222_v63  ;;  %v1187_v17 = vsub.f32 1.5, %v1186_v47 }
 0x27d   : > { %v3332_v15 = vpop.xlane.xlu2 %818  ;;  %v1148_v55 = vmul.f32 %v3369_v52, %v3300_v12  ;;  %v989_v63 = vand.u32 2147483648, %v3298_v11 }
 0x27e   : > { %v1177_v8 = vmul.f32 %v1176_v28, %v3284_v38  ;;  %v984_v49 = vmul.f32 %v3323_v25, %v983_v4  ;;  %v1224_v48 = vmul.f32 %v3328_v51, %v1223_v6  ;;  %v2443_v25 = vadd.f32 -1.0, %v1218_v26 }
 0x27f   : > { %v1149_v58 = vmul.f32 %v3369_v52, %v1148_v55  ;;  %v894_v51 = vsel %vm892_vm2, %v893_v62, %v891_v46  ;;  %v1188_v28 = vmul.f32 %v3362_v50, %v1187_v17  ;;  %v1193_v50 = vand.u32 2147483648, %v3286_v36 }
 0x280   : > { %v1179_v1 = vsel %vm1178_vm3, %v3284_v38, %v1177_v8  ;;  %v985_v7 = vmul.f32 %v984_v49, %v3298_v11  ;;  %v1225_v22 = vmul.f32 %v1224_v48, %v3256_v19  ;;  %v2424_v23 = vadd.f32 -1.0, %v894_v51 }
 0x281   : > { %v1150_v44 = vmul.f32 0.5, %v1149_v58  ;;  %v1182_v30 = vsel %vm1180_vm4, %v1181_v42, %v1179_v1  ;;  %v1462_v62 = vmul.f32 %v2443_v25, %v2443_v25  ;;  %v855_v58 = vsel %vm854_vm7, %v3272_v31, %v853_v24 }
 0x282   : > { %v987_v9 = vsel %vm986_vm10, %v3298_v11, %v985_v7  ;;  %v2440_v32 = vadd.f32 -1.0, %v1182_v30  ;;  %v1227_v33 = vsel %vm1226_vm5, %v3256_v19, %v1225_v22  ;;  %v1376_v35 = vmul.f32 %v2424_v23, %v2424_v23 }
 0x283   : > { %v1151_v60 = vsub.f32 1.5, %v1150_v44  ;;  %v3491_v42 = vsel %vm1303_vm6, %v1462_v62, 0.0  ;;  %v1189_v40 = vmul.f32 %v1188_v28, %v3286_v36  ;;  %v1230_v46 = vsel %vm1228_vm8, %v1229_v54, %v1227_v33 }
 0x284   : > { %v1459_v49 = vmul.f32 %v2440_v32, %v2440_v32  ;;  %v858_v48 = vsel %vm856_vm9, %v857_v56, %v855_v58  ;;  %v2444_v25 = vadd.f32 -1.0, %v1230_v46  ;;  %v3510_v19 = vsel %vm1303_vm6, %v1466_v27, 0.0 }
 0x285   : > { %v3367_v0 = vpop.xlane.xlu1 %1070  ;;  %v1152_v4 = vmul.f32 %v3369_v52, %v1151_v60  ;;  %v990_v52 = vsel %vm988_vm11, %v989_v63, %v987_v9  ;;  %v1191_v51 = vsel %vm1190_vm12, %v3286_v36, %v1189_v40  ;;  %v1157_v31 = vand.u32 2147483648, %v3300_v12 }
 0x286   : > { %2648 = vrsqrt.f32 %v3367_v0  ;;  %v2421_v2 = vadd.f32 -1.0, %v858_v48  ;;  %v3525_v22 = vsel %vm1303_vm6, %v1376_v35, 0.0  ;;  %v3528_v60 = vsel %vm1303_vm6, %v1459_v49, 0.0 }
 0x287   : > { %v3386_v34 = vpop.xlane.xlu2 %809  ;;  %2650 = vrsqrt.f32 %v3332_v15  ;;  %v1153_v11 = vmul.f32 %v1152_v4, %v3300_v12  ;;  %v1194_v63 = vsel %vm1192_vm13, %v1193_v50, %v1191_v51  ;;  %vm1142_vm2 = vcmp.eq.f32.partialorder %v3367_v0, inf }
 0x288   : > { %v1373_v32 = vmul.f32 %v2421_v2, %v2421_v2  ;;  %vm998_vm3 = vcmp.eq.f32.partialorder %v3332_v15, inf  ;;  %vm1144_vm4 = vcmp.eq.f32.partialorder %v3367_v0, 0.0  ;;  %vm1000_vm8 = vcmp.eq.f32.partialorder %v3332_v15, 0.0 }
 0x289   : > { %v1155_v7 = vsel %vm1154_vm14, %v3300_v12, %v1153_v11  ;;  %vm962_vm13 = vcmp.eq.f32.partialorder %v3386_v34, inf }
 0x28a   : > { %v3559_v11 = vsel %vm1303_vm6, %v1373_v32, 0.0 }
 0x28c   : > { %v3412_v37 = vpop.eup %2648 }
 0x28d   : > { %v1136_v39 = vmul.f32 %v3412_v37, %v3367_v0  ;;  %v3446_v3 = vpop.eup %2650 }
 0x28e   : > { %v992_v13 = vmul.f32 %v3446_v3, %v3332_v15 }
 0x28f   : > { %v3437_v53 = vpop.xlane.xlu2 %821  ;;  %v1137_v41 = vmul.f32 %v3412_v37, %v1136_v39  ;;  %v2432_v39 = vadd.f32 -1.0, %v990_v52 }
 0x290   : > { %v993_v16 = vmul.f32 %v3446_v3, %v992_v13  ;;  %v1463_v13 = vmul.f32 %v2444_v25, %v2444_v25  ;;  %vm1010_vm14 = vcmp.eq.f32.partialorder %v3437_v53, inf }
 0x291   : > { %v3360_v21 = vpop.xlane.xlu0 %776  ;;  %v1138_v10 = vmul.f32 0.5, %v1137_v41  ;;  %v1384_v23 = vmul.f32 %v2432_v39, %v2432_v39  ;;  %v1145_v39 = vand.u32 2147483648, %v3367_v0 }
 0x292   : > { %v994_v57 = vmul.f32 0.5, %v993_v16  ;;  %v3552_v40 = vsel %vm1303_vm6, %v1463_v13, 0.0  ;;  %vm830_vm5 = vcmp.eq.f32.partialorder %v3360_v21, inf  ;;  %vm832_vm12 = vcmp.eq.f32.partialorder %v3360_v21, 0.0 }
 0x293   : > { %v1139_v47 = vsub.f32 1.5, %v1138_v10  ;;  %v2441_v10 = vadd.f32 -1.0, %v1194_v63 }
 0x294   : > { %v995_v12 = vsub.f32 1.5, %v994_v57 }
 0x295   : > { %v1140_v56 = vmul.f32 %v3412_v37, %v1139_v47  ;;  %v1158_v37 = vsel %vm1156_vm15, %v1157_v31, %v1155_v7 }
 0x296   : > { %v2438_v58 = vadd.f32 -1.0, %v1158_v37  ;;  %v996_v16 = vmul.f32 %v3446_v3, %v995_v12 }
 0x297   : > { %v3494_v8 = vpop.xlane.xlu2 %517  ;;  %v1141_v33 = vmul.f32 %v1140_v56, %v3367_v0 }
 0x298   : > { %v1457_v51 = vmul.f32 %v2438_v58, %v2438_v58  ;;  %v997_v31 = vmul.f32 %v996_v16, %v3332_v15 }
 0x299   : > { %v3405_v20 = vpop.xlane.xlu0 %1076  ;;  %v1143_v47 = vsel %vm1142_vm2, %v3367_v0, %v1141_v33  ;;  %vm1012_vm2 = vcmp.eq.f32.partialorder %v3437_v53, 0.0 }
 0x29a   : > { %2652 = vrsqrt.f32 %v3405_v20  ;;  %v1146_v2 = vsel %vm1144_vm4, %v1145_v39, %v1143_v47  ;;  %vm1166_vm7 = vcmp.eq.f32.partialorder %v3405_v20, inf  ;;  %v1169_v33 = vand.u32 2147483648, %v3405_v20 }
 0x29b   : > { %2654 = vrsqrt.f32 %v3360_v21  ;;  %v2437_v12 = vadd.f32 -1.0, %v1146_v2  ;;  %vm1168_vm11 = vcmp.eq.f32.partialorder %v3405_v20, 0.0  ;;  %v999_v16 = vsel %vm998_vm3, %v3332_v15, %v997_v31 }
 0x29c   : > { %2656 = vrsqrt.f32 %v3437_v53  ;;  %vm706_vm4 = vcmp.eq.f32.partialorder %v3494_v8, inf }
 0x2a0   : > { %v3455_v18 = vpop.eup %2652 }
 0x2a1   : > { %v3453_v59 = vpop.xlane.xlu0 %812  ;;  %v3465_v55 = vpop.eup %2654  ;;  %v1160_v38 = vmul.f32 %v3455_v18, %v3405_v20 }
 0x2a2   : > { %v824_v6 = vmul.f32 %v3465_v55, %v3360_v21  ;;  %2658 = vrsqrt.f32 %v3453_v59  ;;  %v3512_v54 = vpop.eup %2656  ;;  %vm974_vm15 = vcmp.eq.f32.partialorder %v3453_v59, inf  ;;  %vm976_vm3 = vcmp.eq.f32.partialorder %v3453_v59, 0.0 }
 0x2a3   : > { %v1161_v45 = vmul.f32 %v3455_v18, %v1160_v38  ;;  %v1004_v24 = vmul.f32 %v3512_v54, %v3437_v53  ;;  %v1001_v38 = vand.u32 2147483648, %v3332_v15 }
 0x2a4   : > { %v825_v44 = vmul.f32 %v3465_v55, %v824_v6  ;;  %v3547_v6 = vsel %vm1303_vm6, %v1384_v23, 0.0 }
 0x2a5   : > { %v1162_v1 = vmul.f32 0.5, %v1161_v45  ;;  %v1005_v52 = vmul.f32 %v3512_v54, %v1004_v24 }
 0x2a6   : > { %v826_v41 = vmul.f32 0.5, %v825_v44  ;;  %v1460_v44 = vmul.f32 %v2441_v10, %v2441_v10 }
 0x2a7   : > { %v1163_v62 = vsub.f32 1.5, %v1162_v1  ;;  %v1006_v1 = vmul.f32 0.5, %v1005_v52 }
 0x2a8   : > { %v3522_v17 = vpop.eup %2658  ;;  %v827_v35 = vsub.f32 1.5, %v826_v41  ;;  %v3612_v2 = vsel %vm1303_vm6, %v1460_v44, 0.0 }
 0x2a9   : > { %v3498_v26 = vpop.xlane.xlu0 %1067  ;;  %v968_v36 = vmul.f32 %v3522_v17, %v3453_v59  ;;  %v1164_v46 = vmul.f32 %v3455_v18, %v1163_v62  ;;  %v1007_v37 = vsub.f32 1.5, %v1006_v1 }
 0x2aa   : > { %2660 = vrsqrt.f32 %v3498_v26  ;;  %v828_v57 = vmul.f32 %v3465_v55, %v827_v35  ;;  %vm1130_vm9 = vcmp.eq.f32.partialorder %v3498_v26, inf  ;;  %v1133_v13 = vand.u32 2147483648, %v3498_v26 }
 0x2ab   : > { %2662 = vrsqrt.f32 %v3494_v8  ;;  %v969_v48 = vmul.f32 %v3522_v17, %v968_v36  ;;  %v1165_v7 = vmul.f32 %v1164_v46, %v3405_v20  ;;  %vm1132_vm10 = vcmp.eq.f32.partialorder %v3498_v26, 0.0 }
 0x2ac   : > { %2664 = vrsqrt.f32 %v3386_v34  ;;  %v829_v0 = vmul.f32 %v828_v57, %v3360_v21 }
 0x2ad   : > { %v970_v55 = vmul.f32 0.5, %v969_v48  ;;  %v1167_v62 = vsel %vm1166_vm7, %v3405_v20, %v1165_v7  ;;  %v1008_v48 = vmul.f32 %v3512_v54, %v1007_v37  ;;  %v1475_v7 = vsel %vm1303_vm6, %v1457_v51, 0.0 }
 0x2ae   : > { %v1170_v46 = vsel %vm1168_vm11, %v1169_v33, %v1167_v62 }
 0x2af   : > { %v971_v36 = vsub.f32 1.5, %v970_v55  ;;  %v2439_v31 = vadd.f32 -1.0, %v1170_v46  ;;  %v1009_v55 = vmul.f32 %v1008_v48, %v3437_v53 }
 0x2b0   : > { %v2661_v30 = vpop.eup %2660 }
 0x2b1   : > { %v1124_v27 = vmul.f32 %v2661_v30, %v3498_v26  ;;  %v3535_v28 = vpop.xlane.xlu0 %803  ;;  %v3538_v9 = vpop.eup %2662  ;;  %v972_v57 = vmul.f32 %v3522_v17, %v971_v36  ;;  %v1002_v17 = vsel %vm1000_vm8, %v1001_v38, %v999_v16  ;;  %v1011_v33 = vsel %vm1010_vm14, %v3437_v53, %v1009_v55 }
 0x2b2   : > { %2666 = vrsqrt.f32 %v3535_v28  ;;  %v3544_v4 = vpop.eup %2664  ;;  %v700_v45 = vmul.f32 %v3538_v9, %v3494_v8  ;;  %v2433_v38 = vadd.f32 -1.0, %v1002_v17  ;;  %vm938_vm7 = vcmp.eq.f32.partialorder %v3535_v28, inf }
 0x2b3   : > { %v1125_v50 = vmul.f32 %v2661_v30, %v1124_v27  ;;  %v956_v3 = vmul.f32 %v3544_v4, %v3386_v34  ;;  %v973_v44 = vmul.f32 %v972_v57, %v3453_v59  ;;  %vm964_vm8 = vcmp.eq.f32.partialorder %v3386_v34, 0.0 }
 0x2b4   : > { %v701_v23 = vmul.f32 %v3538_v9, %v700_v45  ;;  %v833_v45 = vand.u32 2147483648, %v3360_v21  ;;  %v1385_v57 = vmul.f32 %v2433_v38, %v2433_v38 }
 0x2b5   : > { %v1126_v49 = vmul.f32 0.5, %v1125_v50  ;;  %v957_v63 = vmul.f32 %v3544_v4, %v956_v3  ;;  %v831_v50 = vsel %vm830_vm5, %v3360_v21, %v829_v0  ;;  %vm708_vm5 = vcmp.eq.f32.partialorder %v3494_v8, 0.0 }
 0x2b6   : > { %v702_v32 = vmul.f32 0.5, %v701_v23  ;;  %v834_v39 = vsel %vm832_vm12, %v833_v45, %v831_v50  ;;  %v977_v50 = vand.u32 2147483648, %v3453_v59  ;;  %v3680_v38 = vsel %vm1303_vm6, %v1385_v57, 0.0 }
 0x2b7   : > { %v1127_v25 = vsub.f32 1.5, %v1126_v49  ;;  %v1456_v49 = vmul.f32 %v2437_v12, %v2437_v12 }
 0x2b8   : > { %v3568_v18 = vpop.eup %2666  ;;  %v703_v20 = vsub.f32 1.5, %v702_v32 }
 0x2b9   : > { %v1128_v56 = vmul.f32 %v2661_v30, %v1127_v25  ;;  %v3573_v41 = vpop.xlane.xlu0 %794  ;;  %v932_v24 = vmul.f32 %v3568_v18, %v3535_v28  ;;  %v1473_v23 = vsel %vm1303_vm6, %v1456_v49, 0.0 }
 0x2ba   : > { %2668 = vrsqrt.f32 %v3573_v41  ;;  %vm904_vm11 = vcmp.eq.f32.partialorder %v3573_v41, 0.0 }
 0x2bb   : > { %v1129_v30 = vmul.f32 %v1128_v56, %v3498_v26  ;;  %v933_v35 = vmul.f32 %v3568_v18, %v932_v24  ;;  %v704_v24 = vmul.f32 %v3538_v9, %v703_v20 }
 0x2bd   : > { %v1131_v27 = vsel %vm1130_vm9, %v3498_v26, %v1129_v30  ;;  %v958_v26 = vmul.f32 0.5, %v957_v63  ;;  %v934_v25 = vmul.f32 0.5, %v933_v35  ;;  %v2419_v63 = vadd.f32 -1.0, %v834_v39 }
 0x2be   : > { %v1134_v10 = vsel %vm1132_vm10, %v1133_v13, %v1131_v27  ;;  %v1013_v13 = vand.u32 2147483648, %v3437_v53  ;;  %vm940_vm9 = vcmp.eq.f32.partialorder %v3535_v28, 0.0  ;;  %vm902_vm10 = vcmp.eq.f32.partialorder %v3573_v41, inf }
 0x2bf   : > { %v2436_v58 = vadd.f32 -1.0, %v1134_v10  ;;  %v959_v56 = vsub.f32 1.5, %v958_v26  ;;  %v935_v0 = vsub.f32 1.5, %v934_v25  ;;  %v1371_v62 = vmul.f32 %v2419_v63, %v2419_v63 }
 0x2c0   : > { %v3599_v52 = vpop.eup %2668  ;;  %v705_v10 = vmul.f32 %v704_v24, %v3494_v8  ;;  %v965_v26 = vand.u32 2147483648, %v3386_v34  ;;  %v1014_v48 = vsel %vm1012_vm2, %v1013_v13, %v1011_v33 }
 0x2c1   : > { %v1455_v47 = vmul.f32 %v2436_v58, %v2436_v58  ;;  %v3603_v3 = vpop.xlane.xlu0 %1094  ;;  %v896_v21 = vmul.f32 %v3599_v52, %v3573_v41  ;;  %v960_v9 = vmul.f32 %v3544_v4, %v959_v56  ;;  %v936_v36 = vmul.f32 %v3568_v18, %v935_v0 }
 0x2c2   : > { %2670 = vrsqrt.f32 %v3603_v3  ;;  %v975_v4 = vsel %vm974_vm15, %v3453_v59, %v973_v44  ;;  %v1387_v49 = vsel %vm1303_vm6, %v1371_v62, 0.0  ;;  %v707_v59 = vsel %vm706_vm4, %v3494_v8, %v705_v10 }
 0x2c3   : > { %v1471_v1 = vsel %vm1303_vm6, %v1455_v47, 0.0  ;;  %v3625_v30 = vpop.xlane.xlu1 %806  ;;  %v897_v15 = vmul.f32 %v3599_v52, %v896_v21  ;;  %v961_v46 = vmul.f32 %v960_v9, %v3386_v34  ;;  %v978_v47 = vsel %vm976_vm3, %v977_v50, %v975_v4 }
 0x2c4   : > { %v1472_v54 = vadd.f32 %v1471_v1, %v3415_v43  ;;  %v1458_v43 = vmul.f32 %v2439_v31, %v2439_v31  ;;  %2672 = vrsqrt.f32 %v3625_v30  ;;  %v937_v20 = vmul.f32 %v936_v36, %v3535_v28 }
 0x2c5   : > { %v898_v58 = vmul.f32 0.5, %v897_v15  ;;  %v709_v1 = vand.u32 2147483648, %v3494_v8  ;;  %v2434_v53 = vadd.f32 -1.0, %v1014_v48  ;;  %v963_v63 = vsel %vm962_vm13, %v3386_v34, %v961_v46 }
 0x2c6   : > { %v1474_v51 = vadd.f32 %v1473_v23, %v1472_v54  ;;  %v1477_v35 = vsel %vm1303_vm6, %v1458_v43, 0.0  ;;  %v2431_v54 = vadd.f32 -1.0, %v978_v47  ;;  %v939_v24 = vsel %vm938_vm7, %v3535_v28, %v937_v20 }
 0x2c7   : > { %v899_v25 = vsub.f32 1.5, %v898_v58  ;;  %v710_v55 = vsel %vm708_vm5, %v709_v1, %v707_v59  ;;  %v3682_v62 = vmul.f32 %v2434_v53, %v2434_v53  ;;  %v905_v4 = vand.u32 2147483648, %v3573_v41 }
 0x2c8   : > { %v3630_v12 = vpop.eup %2670  ;;  %v1476_v37 = vadd.f32 %v1475_v7, %v1474_v51  ;;  %v1389_v7 = vadd.f32 %v3449_v5, %v1387_v49  ;;  %v941_v5 = vand.u32 2147483648, %v3535_v28  ;;  %v1383_v15 = vmul.f32 %v2431_v54, %v2431_v54 }
 0x2c9   : > { %v1232_v27 = vmul.f32 %v3630_v12, %v3603_v3  ;;  %v3637_v32 = vpop.xlane.xlu0 %785  ;;  %v900_v44 = vmul.f32 %v3599_v52, %v899_v25  ;;  %v3689_v28 = vsel %vm1303_vm6, %v710_v55, 0.0  ;;  %vm1238_vm12 = vcmp.eq.f32.partialorder %v3603_v3, inf }
 0x2ca   : > { %2674 = vrsqrt.f32 %v3637_v32  ;;  %v3651_v18 = vadd.f32 %v1477_v35, %v1476_v37  ;;  %v2673_v45 = vpop.eup %2672  ;;  %v3677_v43 = vadd.f32 %v3559_v11, %v1389_v7  ;;  %v942_v13 = vsel %vm940_vm9, %v941_v5, %v939_v24 }
 0x2cb   : > { %v1233_v16 = vmul.f32 %v3630_v12, %v1232_v27  ;;  %v944_v39 = vmul.f32 %v2673_v45, %v3625_v30  ;;  %v966_v37 = vsel %vm964_vm8, %v965_v26, %v963_v63  ;;  %v901_v11 = vmul.f32 %v900_v44, %v3573_v41 }
 0x2cc   : > { %v2428_v10 = vadd.f32 -1.0, %v942_v13  ;;  %v2430_v35 = vadd.f32 -1.0, %v966_v37  ;;  %v3696_v50 = vsel %vm1303_vm6, %v1383_v15, 0.0  ;;  %vm1240_vm13 = vcmp.eq.f32.partialorder %v3603_v3, 0.0 }
 0x2cd   : > { %v1234_v31 = vmul.f32 0.5, %v1233_v16  ;;  %v945_v56 = vmul.f32 %v2673_v45, %v944_v39  ;;  %vm950_vm14 = vcmp.eq.f32.partialorder %v3625_v30, inf  ;;  %v903_v49 = vsel %vm902_vm10, %v3573_v41, %v901_v11 }
 0x2ce   : > { %vm952_vm15 = vcmp.eq.f32.partialorder %v3625_v30, 0.0  ;;  %vm866_vm2 = vcmp.eq.f32.partialorder %v3637_v32, inf  ;;  %v869_v39 = vand.u32 2147483648, %v3637_v32  ;;  %v1382_v57 = vmul.f32 %v2430_v35, %v2430_v35 }
 0x2cf   : > { %v946_v8 = vmul.f32 0.5, %v945_v56  ;;  %v1235_v51 = vsub.f32 1.5, %v1234_v31  ;;  %v953_v25 = vand.u32 2147483648, %v3625_v30  ;;  %vm868_vm3 = vcmp.eq.f32.partialorder %v3637_v32, 0.0 }
 0x2d0   : > { %v2675_v21 = vpop.eup %2674  ;;  %v1480_v5 = vadd.f32 %v3528_v60, %v3651_v18 }
 0x2d1   : > { %v860_v17 = vmul.f32 %v2675_v21, %v3637_v32  ;;  %v3665_v23 = vpop.xlane.xlu0 %1085  ;;  %v947_v34 = vsub.f32 1.5, %v946_v8  ;;  %v1236_v27 = vmul.f32 %v3630_v12, %v1235_v51  ;;  %v1241_v12 = vand.u32 2147483648, %v3603_v3 }
 0x2d2   : > { %2676 = vrsqrt.f32 %v3665_v23  ;;  %v3733_v8 = vsel %vm1303_vm6, %v1382_v57, 0.0  ;;  %vm1202_vm4 = vcmp.eq.f32.partialorder %v3665_v23, inf  ;;  %vm1204_vm5 = vcmp.eq.f32.partialorder %v3665_v23, 0.0 }
 0x2d3   : > { %v861_v0 = vmul.f32 %v2675_v21, %v860_v17  ;;  %v3686_v52 = vpop.xlane.xlu1 %797  ;;  %v948_v46 = vmul.f32 %v2673_v45, %v947_v34  ;;  %v1237_v47 = vmul.f32 %v1236_v27, %v3603_v3  ;;  %v1380_v45 = vmul.f32 %v2428_v10, %v2428_v10 }
 0x2d4   : > { %2678 = vrsqrt.f32 %v3686_v52  ;;  %vm914_vm7 = vcmp.eq.f32.partialorder %v3686_v52, inf  ;;  %vm916_vm8 = vcmp.eq.f32.partialorder %v3686_v52, 0.0 }
 0x2d5   : > { %v862_v9 = vmul.f32 0.5, %v861_v0  ;;  %v949_v7 = vmul.f32 %v948_v46, %v3625_v30  ;;  %v1239_v17 = vsel %vm1238_vm12, %v3603_v3, %v1237_v47  ;;  %v3730_v41 = vsel %vm1303_vm6, %v1380_v45, 0.0 }
 0x2d6   : > { %v1242_v34 = vsel %vm1240_vm13, %v1241_v12, %v1239_v17  ;;  %v917_v45 = vand.u32 2147483648, %v3686_v52  ;;  %v1482_v17 = vadd.f32 %v3612_v2, %v1480_v5 }
 0x2d7   : > { %v863_v33 = vsub.f32 1.5, %v862_v9  ;;  %v951_v13 = vsel %vm950_vm14, %v3625_v30, %v949_v7 }
 0x2d8   : > { %v2677_v36 = vpop.eup %2676  ;;  %v954_v35 = vsel %vm952_vm15, %v953_v25, %v951_v13 }
 0x2d9   : > { %v864_v58 = vmul.f32 %v2675_v21, %v863_v33  ;;  %v1196_v16 = vmul.f32 %v2677_v36, %v3665_v23  ;;  %v3701_v26 = vpop.xlane.xlu0 %1103  ;;  %v906_v21 = vsel %vm904_vm11, %v905_v4, %v903_v49  ;;  %v1205_v33 = vand.u32 2147483648, %v3665_v23 }
 0x2da   : > { %2680 = vrsqrt.f32 %v3701_v26  ;;  %v2679_v59 = vpop.eup %2678  ;;  %v2425_v44 = vadd.f32 -1.0, %v906_v21  ;;  %vm1274_vm9 = vcmp.eq.f32.partialorder %v3701_v26, inf  ;;  %vm1276_vm10 = vcmp.eq.f32.partialorder %v3701_v26, 0.0 }
 0x2db   : > { %v865_v48 = vmul.f32 %v864_v58, %v3637_v32  ;;  %v1197_v20 = vmul.f32 %v2677_v36, %v1196_v16  ;;  %v908_v54 = vmul.f32 %v2679_v59, %v3686_v52  ;;  %v3721_v53 = vpop.xlane.xlu1 %1106  ;;  %v2445_v58 = vadd.f32 -1.0, %v1242_v34 }
 0x2dc   : > { %2682 = vrsqrt.f32 %v3721_v53  ;;  %v1377_v47 = vmul.f32 %v2425_v44, %v2425_v44  ;;  %vm1286_vm11 = vcmp.eq.f32.partialorder %v3721_v53, inf  ;;  %vm1288_vm12 = vcmp.eq.f32.partialorder %v3721_v53, 0.0 }
 0x2dd   : > { %v867_v31 = vsel %vm866_vm2, %v3637_v32, %v865_v48  ;;  %v1198_v1 = vmul.f32 0.5, %v1197_v20  ;;  %v909_v24 = vmul.f32 %v2679_v59, %v908_v54 }
 0x2de   : > { %v870_v56 = vsel %vm868_vm3, %v869_v39, %v867_v31  ;;  %v2429_v39 = vadd.f32 -1.0, %v954_v35 }
 0x2df   : > { %v2422_v63 = vadd.f32 -1.0, %v870_v56  ;;  %v1199_v55 = vsub.f32 1.5, %v1198_v1  ;;  %v910_v37 = vmul.f32 0.5, %v909_v24  ;;  %v1398_v24 = vsel %vm1303_vm6, %v1377_v47, 0.0 }
 0x2e0   : > { %v3727_v32 = vpop.eup %2680 }
 0x2e1   : > { %v1374_v51 = vmul.f32 %v2422_v63, %v2422_v63  ;;  %v1200_v0 = vmul.f32 %v2677_v36, %v1199_v55  ;;  %v1268_v15 = vmul.f32 %v3727_v32, %v3701_v26  ;;  %v3739_v9 = vpop.xlane.xlu0 %511  ;;  %v911_v36 = vsub.f32 1.5, %v910_v37 }
 0x2e2   : > { %2684 = vrsqrt.f32 %v3739_v9  ;;  %v2683_v4 = vpop.eup %2682  ;;  %v1381_v55 = vmul.f32 %v2429_v39, %v2429_v39  ;;  %vm682_vm13 = vcmp.eq.f32.partialorder %v3739_v9, inf  ;;  %vm684_vm14 = vcmp.eq.f32.partialorder %v3739_v9, 0.0 }
 0x2e3   : > { %v1392_v60 = vsel %vm1303_vm6, %v1374_v51, 0.0  ;;  %v1201_v18 = vmul.f32 %v1200_v0, %v3665_v23  ;;  %v1269_v11 = vmul.f32 %v3727_v32, %v1268_v15  ;;  %v912_v12 = vmul.f32 %v2679_v59, %v911_v36  ;;  %v3758_v49 = vpop.xlane.xlu1 %1097 }
 0x2e4   : > { %v1393_v27 = vadd.f32 %v1392_v60, %v3677_v43  ;;  %v1280_v46 = vmul.f32 %v2683_v4, %v3721_v53  ;;  %2686 = vrsqrt.f32 %v3758_v49  ;;  %v1406_v36 = vsel %vm1303_vm6, %v1381_v55, 0.0 }
 0x2e5   : > { %v1203_v10 = vsel %vm1202_vm4, %v3665_v23, %v1201_v18  ;;  %v1270_v3 = vmul.f32 0.5, %v1269_v11  ;;  %v913_v20 = vmul.f32 %v912_v12, %v3686_v52  ;;  %vm1250_vm15 = vcmp.eq.f32.partialorder %v3758_v49, inf }
 0x2e6   : > { %v1206_v16 = vsel %vm1204_vm5, %v1205_v33, %v1203_v10  ;;  %v1395_v43 = vadd.f32 %v3433_v61, %v1393_v27  ;;  %v1281_v30 = vmul.f32 %v2683_v4, %v1280_v46  ;;  %v1464_v61 = vmul.f32 %v2445_v58, %v2445_v58 }
 0x2e7   : > { %v2442_v48 = vadd.f32 -1.0, %v1206_v16  ;;  %v1271_v57 = vsub.f32 1.5, %v1270_v3  ;;  %v915_v31 = vsel %vm914_vm7, %v3686_v52, %v913_v20  ;;  %v1277_v52 = vand.u32 2147483648, %v3701_v26 }
 0x2e8   : > { %v2685_v23 = vpop.eup %2684  ;;  %v1282_v1 = vmul.f32 0.5, %v1281_v30  ;;  %v1397_v21 = vadd.f32 %v3525_v22, %v1395_v43  ;;  %v918_v56 = vsel %vm916_vm8, %v917_v45, %v915_v31  ;;  %v3777_v15 = vsel %vm1303_vm6, %v1464_v61, 0.0 }
 0x2e9   : > { %v676_v59 = vmul.f32 %v2685_v23, %v3739_v9  ;;  %v3767_v25 = vpop.xlane.xlu0 %514  ;;  %v1461_v7 = vmul.f32 %v2442_v48, %v2442_v48  ;;  %v2426_v63 = vadd.f32 -1.0, %v918_v56  ;;  %v1272_v13 = vmul.f32 %v3727_v32, %v1271_v57 }
 0x2ea   : > { %2688 = vrsqrt.f32 %v3767_v25  ;;  %v1283_v44 = vsub.f32 1.5, %v1282_v1  ;;  %v2687_v51 = vpop.eup %2686  ;;  %v1399_v5 = vadd.f32 %v1398_v24, %v1397_v21  ;;  %v1289_v58 = vand.u32 2147483648, %v3721_v53 }
 0x2eb   : > { %v677_v54 = vmul.f32 %v2685_v23, %v676_v59  ;;  %v1378_v22 = vmul.f32 %v2426_v63, %v2426_v63  ;;  %v1244_v37 = vmul.f32 %v2687_v51, %v3758_v49  ;;  %v3781_v2 = vpop.xlane.xlu1 %1109  ;;  %v1483_v18 = vsel %vm1303_vm6, %v1461_v7, 0.0 }
 0x2ec   : > { %2690 = vrsqrt.f32 %v3781_v2  ;;  %v1284_v60 = vmul.f32 %v2683_v4, %v1283_v44  ;;  %v1273_v4 = vmul.f32 %v1272_v13, %v3701_v26  ;;  %v1484_v16 = vadd.f32 %v1483_v18, %v1482_v17 }
 0x2ed   : > { %v678_v0 = vmul.f32 0.5, %v677_v54  ;;  %v1245_v27 = vmul.f32 %v2687_v51, %v1244_v37  ;;  %v1400_v33 = vsel %vm1303_vm6, %v1378_v22, 0.0  ;;  %v685_v45 = vand.u32 2147483648, %v3739_v9 }
 0x2ee   : > { %v1401_v10 = vadd.f32 %v1400_v33, %v1399_v5  ;;  %v1285_v47 = vmul.f32 %v1284_v60, %v3721_v53  ;;  %v1275_v61 = vsel %vm1274_vm9, %v3701_v26, %v1273_v4  ;;  %v1253_v7 = vand.u32 2147483648, %v3758_v49 }
 0x2ef   : > { %v679_v34 = vsub.f32 1.5, %v678_v0  ;;  %v1246_v35 = vmul.f32 0.5, %v1245_v27  ;;  %vm1252_vm2 = vcmp.eq.f32.partialorder %v3758_v49, 0.0  ;;  %v1278_v55 = vsel %vm1276_vm10, %v1277_v52, %v1275_v61 }
 0x2f0   : > { %v2689_v11 = vpop.eup %2688  ;;  %v1403_v12 = vadd.f32 %v3395_v14, %v1401_v10  ;;  %vm694_vm3 = vcmp.eq.f32.partialorder %v3767_v25, inf  ;;  %v697_v26 = vand.u32 2147483648, %v3767_v25  ;;  %v2448_v13 = vadd.f32 -1.0, %v1278_v55 }
 0x2f1   : > { %v688_v32 = vmul.f32 %v2689_v11, %v3767_v25  ;;  %v680_v3 = vmul.f32 %v2685_v23, %v679_v34  ;;  %v1247_v48 = vsub.f32 1.5, %v1246_v35  ;;  %v1486_v23 = vadd.f32 %v3491_v42, %v1484_v16 }
 0x2f2   : > { %v2691_v20 = vpop.eup %2690  ;;  %v1405_v30 = vadd.f32 %v3730_v41, %v1403_v12  ;;  %v1287_v42 = vsel %vm1286_vm11, %v3721_v53, %v1285_v47  ;;  %vm696_vm4 = vcmp.eq.f32.partialorder %v3767_v25, 0.0  ;;  %vm1298_vm5 = vcmp.eq.f32.partialorder %v3781_v2, inf }
 0x2f3   : > { %v681_v46 = vmul.f32 %v680_v3, %v3739_v9  ;;  %v689_v43 = vmul.f32 %v2689_v11, %v688_v32  ;;  %v1248_v57 = vmul.f32 %v2687_v51, %v1247_v48  ;;  %v1292_v59 = vmul.f32 %v2691_v20, %v3781_v2 }
 0x2f4   : > { %v1407_v31 = vadd.f32 %v1406_v36, %v1405_v30  ;;  %v1488_v41 = vadd.f32 %v3552_v40, %v1486_v23  ;;  %v1290_v24 = vsel %vm1288_vm12, %v1289_v58, %v1287_v42  ;;  %v1467_v32 = vmul.f32 %v2448_v13, %v2448_v13 }
 0x2f5   : > { %v683_v39 = vsel %vm682_vm13, %v3739_v9, %v681_v46  ;;  %v690_v14 = vmul.f32 0.5, %v689_v43  ;;  %v1249_v21 = vmul.f32 %v1248_v57, %v3758_v49  ;;  %v1293_v54 = vmul.f32 %v2691_v20, %v1292_v59 }
 0x2f6   : > { %v686_v56 = vsel %vm684_vm14, %v685_v45, %v683_v39  ;;  %v1409_v17 = vadd.f32 %v3733_v8, %v1407_v31  ;;  %v2449_v53 = vadd.f32 -1.0, %v1290_v24  ;;  %v1490_v33 = vadd.f32 %v3777_v15, %v1488_v41 }
 0x2f7   : > { %v691_v1 = vsub.f32 1.5, %v690_v14  ;;  %v1251_v40 = vsel %vm1250_vm15, %v3758_v49, %v1249_v21  ;;  %v1294_v9 = vmul.f32 0.5, %v1293_v54  ;;  %v1329_v51 = vsel %vm1303_vm6, %v686_v56, 0.0 }
 0x2f8   : > { %v1411_v44 = vadd.f32 %v3696_v50, %v1409_v17  ;;  %v1254_v0 = vsel %vm1252_vm2, %v1253_v7, %v1251_v40  ;;  %v1330_v50 = vadd.f32 %v1329_v51, %v3268_v29  ;;  %v1301_v29 = vand.u32 2147483648, %v3781_v2 }
 0x2f9   : > { %v692_v63 = vmul.f32 %v2689_v11, %v691_v1  ;;  %v1295_v52 = vsub.f32 1.5, %v1294_v9  ;;  %v2446_v22 = vadd.f32 -1.0, %v1254_v0  ;;  %v1416_v11 = vsel %vm1303_vm6, %v3682_v62, 0.0 }
 0x2fa   : > { %v1413_v37 = vadd.f32 %v3547_v6, %v1411_v44  ;;  %vm1300_vm7 = vcmp.eq.f32.partialorder %v3781_v2, 0.0  ;;  %v1468_v4 = vmul.f32 %v2449_v53, %v2449_v53  ;;  %v1495_v16 = vsel %vm1303_vm6, %v1467_v32, 0.0 }
 0x2fb   : > { %v693_v8 = vmul.f32 %v692_v63, %v3767_v25  ;;  %v1296_v34 = vmul.f32 %v2691_v20, %v1295_v52  ;;  %v1465_v60 = vmul.f32 %v2446_v22, %v2446_v22  ;;  %v2800_v23 = vmov 128.0  }
 0x2fc   : > { %v1415_v18 = vadd.f32 %v3680_v38, %v1413_v37  ;;  %v1497_v43 = vsel %vm1303_vm6, %v1468_v4, 0.0  ;;  %2692 = vrcp.f32 %v2800_v23 }
 0x2fd   : > { %v695_v49 = vsel %vm694_vm3, %v3767_v25, %v693_v8  ;;  %v1297_v36 = vmul.f32 %v1296_v34, %v3781_v2  ;;  %v1491_v25 = vsel %vm1303_vm6, %v1465_v60, 0.0 }
 0x2fe   : > { %v698_v5 = vsel %vm696_vm4, %v697_v26, %v695_v49  ;;  %v1417_v10 = vadd.f32 %v1416_v11, %v1415_v18  ;;  %v1492_v3 = vadd.f32 %v1491_v25, %v1490_v33 }
 0x2ff   : > { %v1331_v27 = vsel %vm1303_vm6, %v698_v5, 0.0  ;;  %v1299_v62 = vsel %vm1298_vm5, %v3781_v2, %v1297_v36 }
 0x300   : > { %v1332_v6 = vadd.f32 %v1331_v27, %v1330_v50  ;;  %1418 = vadd.xlane.f32.xlu0 %v1417_v10  ;;  %v1302_v15 = vsel %vm1300_vm7, %v1301_v29, %v1299_v62  ;;  %v1494_v35 = vadd.f32 %v3510_v19, %v1492_v3 }
 0x301   : > { %v2450_v58 = vadd.f32 -1.0, %v1302_v15 }
 0x302   : > { %v1334_v38 = vadd.f32 %v3689_v28, %v1332_v6  ;;  %v1496_v12 = vadd.f32 %v1495_v16, %v1494_v35  ;;  %v2693_v2 = vpop.eup %2692 }
 0x303   : > { %v1469_v46 = vmul.f32 %v2450_v58, %v2450_v58  ;;  %v1345_v20 = vmul.f32 128.0, %v2693_v2  ;;  %vm1349_vm8 = vweird.f32 %v2693_v2 }
 0x304   : > { %1335 = vadd.xlane.f32.xlu1 %v1334_v38  ;;  %v1498_v47 = vadd.f32 %v1497_v43, %v1496_v12 }
 0x305   : > { %v1499_v28 = vsel %vm1303_vm6, %v1469_v46, 0.0  ;;  %v1346_v39 = vsub.f32 1.0, %v1345_v20 }
 0x306   : > { %v1500_v48 = vadd.f32 %v1499_v28, %v1498_v47 }
 0x307   : > { %v1347_v61 = vmul.f32 %v2693_v2, %v1346_v39 }
 0x308   : > { %1501 = vadd.xlane.f32.xlu2 %v1500_v48 }
 0x309   : > { %v1348_v7 = vadd.f32 %v2693_v2, %v1347_v61 }
 0x30b   : > { %v1350_v40 = vsel %vm1349_vm8, %v2693_v2, %v1348_v7 }
 0x373   : > { %v1419_v30 = vpop.xlane.xlu0 %1418 }
 0x374   : > { %v1420_v19 = vrot.slane %v1419_v30, 4 }
 0x376   : > { %v1421_v57 = vadd.f32 %v1420_v19, %v1419_v30 }
 0x377   : > { %v1336_v45 = vpop.xlane.xlu1 %1335 }
 0x378   : > { %v1337_v14 = vrot.slane %v1336_v45, 4  ;;  %v1422_v31 = vrot.slane %v1421_v57, 2 }
 0x37a   : > { %v1338_v59 = vadd.f32 %v1337_v14, %v1336_v45  ;;  %v1423_v42 = vadd.f32 %v1422_v31, %v1421_v57 }
 0x37b   : > { %v1502_v41 = vpop.xlane.xlu2 %1501 }
 0x37c   : > { %v1339_v1 = vrot.slane %v1338_v59, 2  ;;  %v1503_v56 = vrot.slane %v1502_v41, 4  ;;  %v1424_v17 = vrot.slane %v1423_v42, 1 }
 0x37e   : > { %v1340_v21 = vadd.f32 %v1339_v1, %v1338_v59  ;;  %v1504_v63 = vadd.f32 %v1503_v56, %v1502_v41  ;;  %v1425_v9 = vadd.f32 %v1424_v17, %v1423_v42 }
 0x380   : > { %v1341_v54 = vrot.slane %v1340_v21, 1  ;;  %v1505_v24 = vrot.slane %v1504_v63, 2 }
 0x382   : > { %v1342_v55 = vadd.f32 %v1341_v54, %v1340_v21  ;;  %v1506_v44 = vadd.f32 %v1505_v24, %v1504_v63 }
 0x384   : > { %2514 = vpush %v1342_v55  ;;  %v1507_v8 = vrot.slane %v1506_v44, 1 }
 0x385   : > { %2516 = vpush %v1350_v40 }
 0x386   : > { %2518 = vpush %v1425_v9  ;;  %v1508_v51 = vadd.f32 %v1507_v8, %v1506_v44 }
 0x388   : > { %2520 = vpush %v1508_v51 }
 0x3b5   : > { %s2515_s20 = spop %2514 }
 0x3b6   : > { %s2517_s26 = spop %2516 }
 0x3b7   : > { %s1352_s11 = smul.f32 %s2517_s26, %s2515_s20  ;;  %s2519_s12 = spop %2518 }
 0x3b8   : > { %s1435_s14 = smul.f32 %s2519_s12, %s2517_s26 }
 0x3b9   : > { %1354 = sst [smem:[%s3852_s29]] %s1352_s11  ;;  %s2521_s15 = spop %2520 }
 0x3ba   : > { %1437 = sst [smem:[%s1436_s9]] %s1435_s14  ;;  %s1518_s13 = smul.f32 %s2521_s15, %s2517_s26 }
 0x3bc   : > { %1520 = sst [smem:[%s1519_s10]] %s1518_s13 }
 0x3bd LB: >> { %v1596_v0 = vld [vmem:[#allocation2 + $0x18] sm:$0xff]  ;;  %v1595_v26 = vld [vmem:[#allocation2 + $0x10] sm:$0xff]  ;;  %v1594_v52 = vld [vmem:[#allocation2 + $0x8] sm:$0xff]  ;;  %v2801_v22 = vmov 0   ;;  %p1529_p11 = scmp.lt.s32.totalorder %s2795_s3, 0  ;;  %s1530_s10 = ssub.s32 0, %s2795_s3  ;;  %s2795_s3 = sphi %s3861_s3, %s1526_s3   ;;  %s2791_s17 = sphi %s3859_s17, %s4314_s17   ;;  %s2787_s0 = sphi %s3857_s0, %s4313_s0  }
 0x3be   : >> { %1657 = vmatpush.msra.mxu0 %v1596_v0  ;;  %2490 = vmatpush.msra.mxu2 %v1596_v0  ;;  %s2451_s13 = smin.u32 %s2795_s3, %s1530_s10  ;;  %v1593_v13 = vld [vmem:[#allocation2] sm:$0xff]  ;;  %s4309_s14 = scalar_lea.vmem %s4297_s2, %s2897_s16 }
 0x3bf   : >> { %2491 = vmatpush.msra.mxu3 %v1596_v0  ;;  %2696 = vset.pattern.permute.xlu2 %v2801_v22  ;;  %s1532_s19 = sand.u32 1, %s2451_s13   ;;  %s2802_s12 = smov 1e-06  }
 0x3c0   : >> { %1658 = vmatpush.msra.mxu0 %v1595_v26  ;;  %2492 = vmatpush.msra.mxu2 %v1595_v26  ;;  %s1533_s20 = ssub.s32 0, %s1532_s19  ;;  %s1526_s3 = sadd.s32 1, %s2795_s3  }
 0x3c1   : >> { %2493 = vmatpush.msra.mxu3 %v1595_v26  ;;  %2695 = vset.pattern.permute.xlu1 %v2801_v22  ;;  %s4321_s20 = smov (!%p1529_p11, %s1533_s20), %s1532_s19  ;;  %p1523_p13 = scmp.ge.s32.totalorder %s1526_s3, 32  }
 0x3c2   : >> { %1659 = vmatpush.msra.mxu0 %v1594_v52  ;;  %2494 = vmatpush.msra.mxu2 %v1594_v52  ;;  %p2453_p12 = scmp.lt.s32.totalorder %s4321_s20, 0  ;;  %s1539_s26 = sadd.s32 2, %s4321_s20 }
 0x3c3   : >> { %2495 = vmatpush.msra.mxu3 %v1594_v52  ;;  %2694 = vset.pattern.permute.xlu0 %v2801_v22 }
 0x3c4   : >> { %1660 = vmatpush.msra.mxu0 %v1593_v13  ;;  %2496 = vmatpush.msra.mxu2 %v1593_v13  ;;  %s4323_s26 = smov (!%p2453_p12, %s1539_s26), %s4321_s20  ;;  %s4310_s20 = scalar_lea.vmem %s4296_s1, %s2897_s16 }
 0x3c5   : >> { %2497 = vmatpush.msra.mxu3 %v1593_v13  ;;  %s3877_s9 = sshll.u32 %s4323_s26, 7 }
 0x3c6   : >> { %s3885_s15 = scalar_lea.vmem %s4309_s14, %s3877_s9  ;;  %s3889_s10 = scalar_lea.vmem %s2906_s28, %s3877_s9 }
 0x3c7   : >> { %v3892_v37 = vld [vmem:[%s3885_s15 + $0x78] sm:$0xff]  ;;  %v3895_v49 = vld [vmem:[%s3885_s15 + $0x68] sm:$0xff]  ;;  %v3903_v5 = vld [vmem:[%s3889_s10] sm:$0xff]  ;;  %s4054_s26 = scalar_lea.vmem %s4310_s20, %s3877_s9 }
 0x3c8   : >> { %v3898_v53 = vld [vmem:[%s3885_s15 + $0x58] sm:$0xff]  ;;  %1803 = vperm.xlu0 %2694, %v3892_v37   ;;  %1793 = vperm.xlu1 %2695, %v3895_v49   ;;  %v3906_v50 = vld [vmem:[%s3889_s10 + $0x30] sm:$0xff]  ;;  %v3909_v34 = vld [vmem:[%s3889_s10 + $0x60] sm:$0xff]  ;;  %v1847_v44 = vsel %vm1303_vm6, %v3895_v49, 0.0  ;;  %v1851_v26 = vsel %vm1303_vm6, %v3892_v37, 0.0 }
 0x3c9   : >> { %1783 = vperm.xlu2 %2696, %v3898_v53   ;;  %2455 = vmatmul.msk.f32.vlgmr.msra.gmra.mxu0 %vm341_vm0, %v3903_v5  ;;  %v3919_v60 = vld [vmem:[%s3885_s15 + $0x70] sm:$0xff]  ;;  %v3922_v18 = vld [vmem:[%s3885_s15 + $0x60] sm:$0xff]  ;;  %v3928_v27 = vld [vmem:[%s3889_s10 + $0x8] sm:$0xff]  ;;  %v1843_v55 = vsel %vm1303_vm6, %v3898_v53, 0.0 }
 0x3ca   : >> { %2461 = vmatmul.msk.f32.vlgmr.msra.gmra.mxu2 %vm341_vm0, %v3906_v50  ;;  %2467 = vmatmul.msk.f32.vlgmr.msra.gmra.mxu3 %vm341_vm0, %v3909_v34  ;;  %v3925_v11 = vld [vmem:[%s3885_s15 + $0x50] sm:$0xff]  ;;  %v3931_v33 = vld [vmem:[%s3889_s10 + $0x38] sm:$0xff]  ;;  %v3934_v6 = vld [vmem:[%s3889_s10 + $0x68] sm:$0xff]  ;;  %v1845_v24 = vsel %vm1303_vm6, %v3922_v18, 0.0  ;;  %v1849_v51 = vsel %vm1303_vm6, %v3919_v60, 0.0 }
 0x3cb   : >> { %v1586_v36 = vld [vmem:[%s3885_s15 + $0x48] sm:$0xff]  ;;  %v1585_v32 = vld [vmem:[%s3885_s15 + $0x40] sm:$0xff]  ;;  %v1584_v25 = vld [vmem:[%s3885_s15 + $0x38] sm:$0xff]  ;;  %v1841_v17 = vsel %vm1303_vm6, %v3925_v11, 0.0 }
 0x3cc   : >> { %v3949_v10 = vld [vmem:[%s3889_s10 + $0x10] sm:$0xff]  ;;  %v3952_v29 = vld [vmem:[%s3889_s10 + $0x40] sm:$0xff]  ;;  %v1578_v38 = vld [vmem:[%s3885_s15 + $0x8] sm:$0xff]  ;;  %v1835_v41 = vsel %vm1303_vm6, %v1584_v25, 0.0  ;;  %v1837_v7 = vsel %vm1303_vm6, %v1585_v32, 0.0  ;;  %v1839_v56 = vsel %vm1303_vm6, %v1586_v36, 0.0 }
 0x3cd   : >> { %v3955_v3 = vld [vmem:[%s3889_s10 + $0x70] sm:$0xff]  ;;  %v1577_v62 = vld [vmem:[%s3885_s15] sm:$0xff]  ;;  %v1582_v15 = vld [vmem:[%s3885_s15 + $0x28] sm:$0xff]  ;;  %v1823_v35 = vsel %vm1303_vm6, %v1578_v38, 0.0 }
 0x3ce   : >> { %v1583_v4 = vld [vmem:[%s3885_s15 + $0x30] sm:$0xff]  ;;  %v1822_v58 = vsel %vm1303_vm6, %v1577_v62, 0.0  ;;  %v1581_v16 = vld [vmem:[%s3885_s15 + $0x20] sm:$0xff]  ;;  %v1546_v12 = vld [vmem:[%s3889_s10 + $0x18] sm:$0xff]  ;;  %v1831_v57 = vsel %vm1303_vm6, %v1582_v15, 0.0 }
 0x3cf   : >> { %v3972_v46 = vld [vmem:[%s3889_s10 + $0x48] sm:$0xff]  ;;  %v3975_v43 = vld [vmem:[%s3889_s10 + $0x78] sm:$0xff]  ;;  %v1579_v47 = vld [vmem:[%s3885_s15 + $0x10] sm:$0xff]  ;;  %v1824_v28 = vadd.f32 %v1823_v35, %v1822_v58  ;;  %v1829_v45 = vsel %vm1303_vm6, %v1581_v16, 0.0  ;;  %v1833_v1 = vsel %vm1303_vm6, %v1583_v4, 0.0 }
 0x3d0   : >> { %1798 = vperm.xlu0 %2694, %v3919_v60   ;;  %1788 = vperm.xlu1 %2695, %v3922_v18   ;;  %v1825_v48 = vsel %vm1303_vm6, %v1579_v47, 0.0  ;;  %v1580_v23 = vld [vmem:[%s3885_s15 + $0x18] sm:$0xff]  ;;  %v1547_v30 = vld [vmem:[%s3889_s10 + $0x20] sm:$0xff]  ;;  %v3988_v39 = vld [vmem:[%s3889_s10 + $0x50] sm:$0xff]  ;;  %s2006_s15 = smul.f32 0.9, %s2791_s17  }
 0x3d1   : >> { %1778 = vperm.xlu2 %2696, %v3925_v11   ;;  %2456 = vmatmul.msk.f32.gmra.mxu0 %vm341_vm0, %v3928_v27  ;;  %v1826_v2 = vadd.f32 %v1825_v48, %v1824_v28  ;;  %v1827_v20 = vsel %vm1303_vm6, %v1580_v23, 0.0  ;;  %v1548_v59 = vld [vmem:[%s3889_s10 + $0x28] sm:$0xff]  ;;  %v3997_v61 = vld [vmem:[%s3889_s10 + $0x58] sm:$0xff]  ;;  %v1560_v48 = vld [vmem:[%s4054_s26] sm:$0xff]  ;;  %s2007_s10 = smul.f32 0.999, %s2787_s0  }
 0x3d2   : >> { %2462 = vmatmul.msk.f32.gmra.mxu2 %vm341_vm0, %v3931_v33  ;;  %2468 = vmatmul.msk.f32.gmra.mxu3 %vm341_vm0, %v3934_v6  ;;  %s2044_s13 = ssub.f32 1.0, %s2006_s15  ;;  %s4314_s17 = smov %s2006_s15 }
 0x3d3   : >> { %v1828_v19 = vadd.f32 %v1827_v20, %v1826_v2  ;;  %s2066_s19 = ssub.f32 1.0, %s2007_s10  ;;  %s4313_s0 = smov %s2007_s10 }
 0x3d4   : > { %s4315_s0 = sand.u32 (%p1523_p13), 1, %s2775_s22   ;;  %s2729_s10 = scalar_lea.vmem (%p1523_p13), %s4301_s6, 2 }
 0x3d5   : >> { %v1830_v14 = vadd.f32 %v1829_v45, %v1828_v19  ;;  %s2234_s3 = scalar_lea.sflag (%p1523_p13), [#allocation6], %s4315_s0 }
 0x3d7   : >> { %v1832_v31 = vadd.f32 %v1831_v57, %v1830_v14 }
 0x3d8   : >> { %1773 = vperm.xlu0 %2694, %v1586_v36   ;;  %1768 = vperm.xlu1 %2695, %v1585_v32  }
 0x3d9   : >> { %1763 = vperm.xlu2 %2696, %v1584_v25   ;;  %2457 = vmatmul.msk.f32.gmra.mxu0 %vm341_vm0, %v3949_v10  ;;  %v1834_v42 = vadd.f32 %v1833_v1, %v1832_v31 }
 0x3da   : >> { %2463 = vmatmul.msk.f32.gmra.mxu2 %vm341_vm0, %v3952_v29  ;;  %2469 = vmatmul.msk.f32.gmra.mxu3 %vm341_vm0, %v3955_v3 }
 0x3db   : >> { %v1836_v21 = vadd.f32 %v1835_v41, %v1834_v42  ;;  %v1575_v42 = vld [vmem:[%s4054_s26 + $0x78] sm:$0xff]  ;;  %v1564_v41 = vld [vmem:[%s4054_s26 + $0x20] sm:$0xff] }
 0x3dd   : >> { %v1838_v54 = vadd.f32 %v1837_v7, %v1836_v21  ;;  %v1573_v21 = vld [vmem:[%s4054_s26 + $0x68] sm:$0xff] }
 0x3df   : >> { %v1840_v63 = vadd.f32 %v1839_v56, %v1838_v54 }
 0x3e0   : >> { %1758 = vperm.xlu0 %2694, %v1583_v4   ;;  %1753 = vperm.xlu1 %2695, %v1582_v15  }
 0x3e1   : >> { %1748 = vperm.xlu2 %2696, %v1581_v16   ;;  %2458 = vmatmul.msk.f32.gmra.mxu0 %vm341_vm0, %v1546_v12  ;;  %v1842_v40 = vadd.f32 %v1841_v17, %v1840_v63 }
 0x3e2   : >> { %2464 = vmatmul.msk.f32.gmra.mxu2 %vm341_vm0, %v3972_v46  ;;  %2470 = vmatmul.msk.f32.gmra.mxu3 %vm341_vm0, %v3975_v43 }
 0x3e3   : >> { %v1844_v9 = vadd.f32 %v1843_v55, %v1842_v40  ;;  %v1572_v40 = vld [vmem:[%s4054_s26 + $0x60] sm:$0xff] }
 0x3e5   : >> { %v1846_v8 = vadd.f32 %v1845_v24, %v1844_v9 }
 0x3e7   : >> { %v1848_v0 = vadd.f32 %v1847_v44, %v1846_v8 }
 0x3e8   : >> { %1743 = vperm.xlu0 %2694, %v1580_v23   ;;  %1738 = vperm.xlu1 %2695, %v1579_v47  }
 0x3e9   : >> { %1733 = vperm.xlu2 %2696, %v1578_v38   ;;  %2459 = vmatmul.msk.f32.gmra.mxu0 %vm341_vm0, %v1547_v30  ;;  %v1850_v52 = vadd.f32 %v1849_v51, %v1848_v0  ;;  %v1566_v51 = vld [vmem:[%s4054_s26 + $0x30] sm:$0xff] }
 0x3ea   : >> { %2465 = vmatmul.msk.f32.gmra.mxu2 %vm341_vm0, %v3988_v39 }
 0x3eb   : >> { %v1852_v22 = vadd.f32 %v1851_v26, %v1850_v52 }
 0x3f0   : >> { %1728 = vperm.xlu0 %2694, %v1577_v62  }
 0x3f1   : >> { %2460 = vmatmul.msk.f32.gmra.mxu0 %vm341_vm0, %v1548_v59 }
 0x3f2   : >> { %2466 = vmatmul.msk.f32.gmra.mxu2 %vm341_vm0, %v3997_v61 }
 0x40f   : >> { %1939 = vxpose.xlu2.b32.start [1/16] (narrow) %v3903_v5, 32 }
 0x412   : >> { %1853 = vadd.xlane.f32.xlu1 %v1852_v22 }
 0x417   : >> { %1940 = vxpose.xlu2.b32.cont [2/16] (narrow) %v3928_v27, 32 }
 0x41f   : >> { %1941 = vxpose.xlu2.b32.cont [3/16] (narrow) %v3949_v10, 32 }
 0x423   : >> { %v4021_v13 = vpop.permute.xlu2 %1783 }
 0x427   : >> { %1942 = vxpose.xlu2.b32.cont [4/16] (narrow) %v1546_v12, 32  ;;  %v1562_v12 = vld [vmem:[%s4054_s26 + $0x10] sm:$0xff] }
 0x42b   : >> { %v4027_v37 = vpop.permute.xlu2 %1778 }
 0x42f   : >> { %1943 = vxpose.xlu2.b32.cont [5/16] (narrow) %v1547_v30, 32 }
 0x433   : >> { %v4035_v11 = vpop.permute.xlu2 %1763 }
 0x437   : >> { %1944 = vxpose.xlu2.b32.cont [6/16] (narrow) %v1548_v59, 32  ;;  %v1574_v59 = vld [vmem:[%s4054_s26 + $0x70] sm:$0xff] }
 0x43a   : >> { %v4023_v49 = vpop.permute.xlu0 %1803  ;;  %v4025_v53 = vpop.permute.xlu1 %1793 }
 0x43f   : >> { %1945 = vxpose.xlu2.b32.cont [7/16] (narrow) %v3906_v50, 32  ;;  %v1749_v50 = vpop.permute.xlu2 %1748 }
 0x442   : >> { %v4030_v5 = vpop.permute.xlu0 %1798  ;;  %v4032_v60 = vpop.permute.xlu1 %1788 }
 0x446   : >> { %v1662_v18 = vpop.f32.mrf.mxu0 }
 0x447   : >> { %1946 = vxpose.xlu2.b32.cont [8/16] (narrow) %v3931_v33, 32  ;;  %v1734_v16 = vpop.permute.xlu2 %1733  ;;  %v1710_v19 = vsub.f32 %v1662_v18, %v1560_v48 }
 0x44a   : >> { %v4037_v27 = vpop.permute.xlu0 %1773  ;;  %v4039_v36 = vpop.permute.xlu1 %1768 }
 0x44d   : >> { %v4041_v32 = vpop.f32.mrf.mxu2  ;;  %v4043_v25 = vpop.f32.mrf.mxu3 }
 0x44e   : >> { %v1665_v10 = vpop.f32.mrf.mxu0  ;;  %v1722_v18 = vsub.f32 %v4043_v25, %v1572_v40  ;;  %v1568_v25 = vld [vmem:[%s4054_s26 + $0x40] sm:$0xff] }
 0x44f   : >> { %1947 = vxpose.xlu2.b32.cont [9/16] (narrow) %v3952_v29, 32  ;;  %v1561_v29 = vld [vmem:[%s4054_s26 + $0x8] sm:$0xff] }
 0x450   : >> { %v1711_v35 = vsub.f32 %v1665_v10, %v1561_v29  ;;  %v1567_v10 = vld [vmem:[%s4054_s26 + $0x38] sm:$0xff] }
 0x452   : >> { %v4046_v38 = vpop.permute.xlu0 %1758  ;;  %v4058_v4 = vpop.permute.xlu1 %1753  ;;  %v4066_v23 = vmul.f32 %v1734_v16, %v1711_v35  ;;  %v1818_v16 = vmul.f32 %v4032_v60, %v1722_v18 }
 0x454   : >> { %v1881_v45 = vmul.f32 %v4066_v23, %v4066_v23 }
 0x455   : >> { %v4056_v33 = vpop.f32.mrf.mxu2  ;;  %v1701_v62 = vpop.f32.mrf.mxu3 }
 0x456   : >> { %v1668_v15 = vpop.f32.mrf.mxu0  ;;  %v1897_v17 = vsel %vm307_vm1, %v1881_v45, 0.0  ;;  %v1723_v0 = vsub.f32 %v1701_v62, %v1573_v21  ;;  %v1717_v35 = vsub.f32 %v4056_v33, %v1567_v10 }
 0x457   : >> { %1948 = vxpose.xlu2.b32.cont [10/16] (narrow) %v3972_v46, 32  ;;  %v1712_v20 = vsub.f32 %v1668_v15, %v1562_v12  ;;  %v1563_v46 = vld [vmem:[%s4054_s26 + $0x18] sm:$0xff]  ;;  %v1569_v12 = vld [vmem:[%s4054_s26 + $0x48] sm:$0xff] }
 0x458   : >> { %v1813_v60 = vmul.f32 %v4035_v11, %v1717_v35 }
 0x45a   : >> { %v1744_v58 = vpop.permute.xlu0 %1743  ;;  %v1739_v30 = vpop.permute.xlu1 %1738 }
 0x45b   : >> { %v4072_v57 = vmul.f32 %v1739_v30, %v1712_v20  ;;  %v1570_v30 = vld [vmem:[%s4054_s26 + $0x50] sm:$0xff] }
 0x45d   : >> { %v4063_v47 = vpop.f32.mrf.mxu2  ;;  %v1704_v28 = vpop.f32.mrf.mxu3  ;;  %v1882_v24 = vmul.f32 %v4072_v57, %v4072_v57 }
 0x45e   : >> { %v1671_v2 = vpop.f32.mrf.mxu0  ;;  %v1724_v54 = vsub.f32 %v1704_v28, %v1574_v59  ;;  %v1718_v48 = vsub.f32 %v4063_v47, %v1568_v25 }
 0x45f   : >> { %1949 = vxpose.xlu2.b32.cont [11/16] (narrow) %v3988_v39, 32  ;;  %v1713_v31 = vsub.f32 %v1671_v2, %v1563_v46  ;;  %v1899_v62 = vsel %vm307_vm1, %v1882_v24, 0.0 }
 0x460   : >> { %v4099_v15 = vmul.f32 %v4030_v5, %v1724_v54  ;;  %v1565_v5 = vld [vmem:[%s4054_s26 + $0x28] sm:$0xff]  ;;  %v1814_v47 = vmul.f32 %v4039_v36, %v1718_v48 }
 0x461   : >> { %v4086_v9 = vmul.f32 %v1744_v58, %v1713_v31  ;;  %v1571_v31 = vld [vmem:[%s4054_s26 + $0x58] sm:$0xff] }
 0x462   : >> { %v1729_v14 = vpop.permute.xlu0 %1728  ;;  %v1888_v54 = vmul.f32 %v1814_v47, %v1814_v47 }
 0x463   : >> { %v4075_v1 = vmul.f32 %v1729_v14, %v1710_v19 }
 0x465   : >> { %v1880_v39 = vmul.f32 %v4075_v1, %v4075_v1  ;;  %v1689_v7 = vpop.f32.mrf.mxu2  ;;  %v1707_v56 = vpop.f32.mrf.mxu3 }
 0x466   : >> { %v1725_v63 = vsub.f32 %v1707_v56, %v1575_v42  ;;  %v1674_v55 = vpop.f32.mrf.mxu0  ;;  %v1719_v46 = vsub.f32 %v1689_v7, %v1569_v12 }
 0x467   : >> { %v1896_v44 = vsel %vm307_vm1, %v1880_v39, 0.0  ;;  %v1714_v8 = vsub.f32 %v1674_v55, %v1564_v41  ;;  %1950 = vxpose.xlu2.b32.cont [12/16] (narrow) %v3997_v61, 32  ;;  %v1716_v61 = vsub.f32 %v4041_v32, %v1566_v51  ;;  %v1887_v41 = vmul.f32 %v1813_v60, %v1813_v60 }
 0x468   : >> { %v1898_v26 = vadd.f32 %v1897_v17, %v1896_v44  ;;  %v4092_v52 = vmul.f32 %v4023_v49, %v1725_v63  ;;  %v1883_v49 = vmul.f32 %v4086_v9, %v4086_v9 }
 0x469   : >> { %v4094_v22 = vmul.f32 %v1749_v50, %v1714_v8  ;;  %v4108_v50 = vmul.f32 %v4025_v53, %v1723_v0  ;;  %v1812_v28 = vmul.f32 %v4046_v38, %v1716_v61  ;;  %v1909_v63 = vsel %vm307_vm1, %v1887_v41, 0.0 }
 0x46a   : >> { %1971 = vmatpush.msra.mxu1 %v4092_v52  ;;  %2498 = vmatpush.msrb.mxu3 %v4092_v52  ;;  %v1900_v29 = vadd.f32 %v1899_v62, %v1898_v26  ;;  %v1901_v2 = vsel %vm307_vm1, %v1883_v49, 0.0  ;;  %v1894_v62 = vmul.f32 %v4099_v15, %v4099_v15 }
 0x46b   : >> { %v1884_v32 = vmul.f32 %v4094_v22, %v4094_v22  ;;  %v1886_v38 = vmul.f32 %v1812_v28, %v1812_v28  ;;  %v1893_v18 = vmul.f32 %v4108_v50, %v4108_v50 }
 0x46c   : >> { %1972 = vmatpush.msra.mxu1 %v4099_v15  ;;  %2499 = vmatpush.msrb.mxu3 %v4099_v15  ;;  %v1902_v20 = vadd.f32 %v1901_v2, %v1900_v29  ;;  %v1923_v35 = vsel %vm307_vm1, %v1894_v62, 0.0 }
 0x46d   : >> { %v1692_v58 = vpop.f32.mrf.mxu2  ;;  %v1903_v19 = vsel %vm307_vm1, %v1884_v32, 0.0  ;;  %v1907_v7 = vsel %vm307_vm1, %v1886_v38, 0.0  ;;  %v1921_v25 = vsel %vm307_vm1, %v1893_v18, 0.0  ;;  %v2045_v38 = vstv %s2044_s13  ;;  %v2008_v18 = vld [vmem:[#allocation3] sm:$0xff] }
 0x46e   : >> { %1973 = vmatpush.msra.mxu1 %v4108_v50  ;;  %2500 = vmatpush.msrb.mxu3 %v4108_v50  ;;  %v1677_v53 = vpop.f32.mrf.mxu0  ;;  %v1720_v14 = vsub.f32 %v1692_v58, %v1570_v30  ;;  %v1904_v42 = vadd.f32 %v1903_v19, %v1902_v20  ;;  %vm2051_vm13 = vweird.f32 %v2045_v38 }
 0x46f   : >> { %v1715_v33 = vsub.f32 %v1677_v53, %v1565_v5  ;;  %1951 = vxpose.xlu2.b32.cont [13/16] (narrow) %v3909_v34, 32  ;;  %v1815_v34 = vmul.f32 %v4037_v27, %v1719_v46  ;;  %v1911_v27 = vsel %vm307_vm1, %v1888_v54, 0.0  ;;  %v2057_v54 = vand.u32 2147483648, %v2045_v38 }
 0x470   : >> { %1974 = vmatpush.msra.mxu1 %v1818_v16  ;;  %2501 = vmatpush.msrb.mxu3 %v1818_v16 }
 0x471   : >> { %v1811_v45 = vmul.f32 %v4058_v4, %v1715_v33  ;;  %v1816_v4 = vmul.f32 %v4027_v37, %v1720_v14  ;;  %v1889_v55 = vmul.f32 %v1815_v34, %v1815_v34 }
 0x473   : >> { %v1885_v59 = vmul.f32 %v1811_v45, %v1811_v45  ;;  %v1890_v24 = vmul.f32 %v1816_v4, %v1816_v4  ;;  %v1913_v8 = vsel %vm307_vm1, %v1889_v55, 0.0 }
 0x475   : >> { %v1905_v21 = vsel %vm307_vm1, %v1885_v59, 0.0  ;;  %v1695_v39 = vpop.f32.mrf.mxu2 }
 0x476   : >> { %v1906_v56 = vadd.f32 %v1905_v21, %v1904_v42  ;;  %v1721_v11 = vsub.f32 %v1695_v39, %v1571_v31 }
 0x477   : >> { %1952 = vxpose.xlu2.b32.cont [14/16] (narrow) %v3934_v6, 32  ;;  %v1892_v6 = vmul.f32 %v1818_v16, %v1818_v16 }
 0x478   : >> { %v1908_v36 = vadd.f32 %v1907_v7, %v1906_v56  ;;  %v1817_v17 = vmul.f32 %v4021_v13, %v1721_v11  ;;  %v1915_v13 = vsel %vm307_vm1, %v1890_v24, 0.0  ;;  %v2058_v24 = vor.u32 1.1754944e-38, %v2057_v54 }
 0x479   : >> { %v1919_v61 = vsel %vm307_vm1, %v1892_v6, 0.0 }
 0x47a   : >> { %v1910_v40 = vadd.f32 %v1909_v63, %v1908_v36  ;;  %1975 = vmatpush.msra.mxu1 %v1817_v17  ;;  %2502 = vmatpush.msrb.mxu3 %v1817_v17  ;;  %v1891_v37 = vmul.f32 %v1817_v17, %v1817_v17  ;;  %v2055_v36 = vand.u32 2147483647, %v2045_v38 }
 0x47c   : >> { %v1912_v44 = vadd.f32 %v1911_v27, %v1910_v40  ;;  %1976 = vmatpush.msra.mxu1 %v1816_v4  ;;  %2503 = vmatpush.msrb.mxu3 %v1816_v4  ;;  %v1917_v26 = vsel %vm307_vm1, %v1891_v37, 0.0  ;;  %vm2056_vm5 = vcmp.eq.f32.partialorder %v2055_v36, 8.507059e+37 }
 0x47e   : >> { %v1914_v51 = vadd.f32 %v1913_v8, %v1912_v44  ;;  %1977 = vmatpush.msra.mxu1 %v1815_v34  ;;  %2504 = vmatpush.msrb.mxu3 %v1815_v34 }
 0x47f   : >> { %1953 = vxpose.xlu2.b32.cont [15/16] (narrow) %v3955_v3, 32  ;;  %v1895_v3 = vmul.f32 %v4092_v52, %v4092_v52 }
 0x480   : >> { %v1916_v0 = vadd.f32 %v1915_v13, %v1914_v51  ;;  %1978 = vmatpush.msra.mxu1 %v1814_v47  ;;  %2505 = vmatpush.msrb.mxu3 %v1814_v47  ;;  %v2067_v47 = vstv %s2066_s19 }
 0x481   : >> { %v1925_v58 = vsel %vm307_vm1, %v1895_v3, 0.0  ;;  %vm2073_vm15 = vweird.f32 %v2067_v47  ;;  %v2079_v17 = vand.u32 2147483648, %v2067_v47  ;;  %v2077_v40 = vand.u32 2147483647, %v2067_v47 }
 0x482   : >> { %v1918_v10 = vadd.f32 %v1917_v26, %v1916_v0  ;;  %1979 = vmatpush.msra.mxu1 %v1813_v60  ;;  %2506 = vmatpush.msrb.mxu3 %v1813_v60 }
 0x483   : >> { %v2080_v8 = vor.u32 1.1754944e-38, %v2079_v17  ;;  %vm2078_vm7 = vcmp.eq.f32.partialorder %v2077_v40, 8.507059e+37 }
 0x484   : >> { %1980 = vmatpush.msra.mxu1 %v1812_v28  ;;  %2507 = vmatpush.msrb.mxu3 %v1812_v28  ;;  %v1920_v49 = vadd.f32 %v1919_v61, %v1918_v10  ;;  %v2024_v61 = vld [vmem:[#allocation4] sm:$0xff] }
 0x485   : >> { %v1854_v29 = vpop.xlane.xlu1 %1853 }
 0x486   : >> { %1981 = vmatpush.msra.mxu1 %v1811_v45  ;;  %2508 = vmatpush.msrb.mxu3 %v1811_v45  ;;  %v1922_v50 = vadd.f32 %v1921_v25, %v1920_v49  ;;  %v1855_v5 = vrot.slane %v1854_v29, 4  ;;  %v2012_v49 = vmul.f32 0.9, %v2008_v18  ;;  %v2028_v25 = vmul.f32 0.999, %v2024_v61 }
 0x487   : >> { %1954 = vxpose.xlu2.b32.end [16/16] (narrow) %v3975_v43, 32 }
 0x488   : >> { %1982 = vmatpush.msra.mxu1 %v4094_v22  ;;  %2509 = vmatpush.msrb.mxu3 %v4094_v22  ;;  %v1924_v15 = vadd.f32 %v1923_v35, %v1922_v50  ;;  %v1856_v32 = vadd.f32 %v1855_v5, %v1854_v29  ;;  %v2009_v35 = vld [vmem:[#allocation3 + $0x8] sm:$0xff] }
 0x48a   : >> { %1983 = vmatpush.msra.mxu1 %v4086_v9  ;;  %2510 = vmatpush.msrb.mxu3 %v4086_v9  ;;  %v1926_v52 = vadd.f32 %v1925_v58, %v1924_v15  ;;  %v1857_v16 = vrot.slane %v1856_v32, 2  ;;  %v2025_v58 = vld [vmem:[#allocation4 + $0x8] sm:$0xff] }
 0x48c   : >> { %1984 = vmatpush.msra.mxu1 %v4072_v57  ;;  %2511 = vmatpush.msrb.mxu3 %v4072_v57  ;;  %v1858_v43 = vadd.f32 %v1857_v16, %v1856_v32  ;;  %v2013_v16 = vmul.f32 0.9, %v2009_v35 }
 0x48d   : >> { %1927 = vadd.xlane.f32.xlu0 %v1926_v52 }
 0x48e   : >> { %1985 = vmatpush.msra.mxu1 %v4066_v23  ;;  %2512 = vmatpush.msrb.mxu3 %v4066_v23  ;;  %v1859_v22 = vrot.slane %v1858_v43, 1 }
 0x490   : >> { %1986 = vmatpush.msra.mxu1 %v4075_v1  ;;  %2513 = vmatpush.msrb.mxu3 %v4075_v1  ;;  %v1860_v12 = vadd.f32 %v1859_v22, %v1858_v43  ;;  %v2029_v22 = vmul.f32 0.999, %v2025_v58 }
 0x492   : >> { %2522 = vpush %v1860_v12 }
 0x4a8   : >> { %v1955_v9 = vpop.trf.xlu2 }
 0x4a9   : >> { %1987 = vmatmul.f32.vlgmr.msra.gmra.mxu1 %v1955_v9 }
 0x4b0   : >> { %v1956_v53 = vpop.trf.xlu2 }
 0x4b1   : >> { %1990 = vmatmul.f32.gmra.mxu1 %v1956_v53 }
 0x4b8   : >> { %v1957_v28 = vpop.trf.xlu2 }
 0x4b9   : >> { %1993 = vmatmul.f32.gmra.mxu1 %v1957_v28  ;;  %v2010_v28 = vld [vmem:[#allocation3 + $0x10] sm:$0xff] }
 0x4c0   : >> { %v1958_v57 = vpop.trf.xlu2 }
 0x4c1   : >> { %1996 = vmatmul.f32.vlgmr.msrb.gmra.mxu3 %v1958_v57 }
 0x4c3   : >> { %s2523_s9 = spop %2522 }
 0x4c4   : >> { %s1862_s11 = smul.f32 3.0, %s2523_s9 }
 0x4c6   : >> { %s1863_s14 = smax.f32 %s2802_s12, %s1862_s11  ;;  %s1937_s11 = scalar_lea.smem %s3852_s29, 3 [#allocation5] }
 0x4c7   : >> { %v1864_v23 = vstv %s1863_s14 }
 0x4c8   : >> { %2697 = vrcp.f32 %v1864_v23  ;;  %v1876_v2 = vand.u32 2147483648, %v1864_v23  ;;  %vm1870_vm9 = vweird.f32 %v1864_v23  ;;  %v1874_v20 = vand.u32 2147483647, %v1864_v23 }
 0x4c9   : >> { %2699 = vrcp.f32 %v2045_v38 }
 0x4ca   : >> { %v1877_v60 = vor.u32 1.1754944e-38, %v1876_v2  ;;  %vm1875_vm12 = vcmp.eq.f32.partialorder %v1874_v20, 8.507059e+37  ;;  %2701 = vrcp.f32 %v2067_v47  ;;  %v2014_v2 = vmul.f32 0.9, %v2010_v28 }
 0x4ce   : >> { %v2698_v48 = vpop.eup %2697 }
 0x4cf   : >> { %v1866_v1 = vmul.f32 %v2698_v48, %v1864_v23  ;;  %vm1871_vm10 = vweird.f32 %v2698_v48  ;;  %v2700_v14 = vpop.eup %2699 }
 0x4d0   : >> { %vm1872_vm11 = vmor %vm1870_vm9, %vm1871_vm10  ;;  %v2702_v59 = vpop.eup %2701  ;;  %v2047_v31 = vmul.f32 %v2700_v14, %v2045_v38  ;;  %vm2052_vm14 = vweird.f32 %v2700_v14 }
 0x4d1   : >> { %v1867_v33 = vsub.f32 1.0, %v1866_v1  ;;  %v2069_v42 = vmul.f32 %v2702_v59, %v2067_v47  ;;  %vm2074_vm2 = vweird.f32 %v2702_v59  ;;  %vm2053_vm3 = vmor %vm2051_vm13, %vm2052_vm14 }
 0x4d2   : >> { %v2048_v41 = vsub.f32 1.0, %v2047_v31  ;;  %vm2075_vm4 = vmor %vm2073_vm15, %vm2074_vm2  ;;  %v2011_v31 = vld [vmem:[#allocation3 + $0x18] sm:$0xff] }
 0x4d3   : >> { %v1868_v30 = vmul.f32 %v2698_v48, %v1867_v33  ;;  %v2070_v34 = vsub.f32 1.0, %v2069_v42  ;;  %v2027_v42 = vld [vmem:[#allocation4 + $0x18] sm:$0xff] }
 0x4d4   : >> { %v2049_v39 = vmul.f32 %v2700_v14, %v2048_v41 }
 0x4d5   : >> { %v1869_v46 = vadd.f32 %v2698_v48, %v1868_v30  ;;  %v2071_v11 = vmul.f32 %v2702_v59, %v2070_v34  ;;  %v2015_v34 = vmul.f32 0.9, %v2011_v31 }
 0x4d6   : >> { %v2050_v4 = vadd.f32 %v2700_v14, %v2049_v39  ;;  %v2031_v39 = vmul.f32 0.999, %v2027_v42 }
 0x4d7   : >> { %v1873_v19 = vsel %vm1872_vm11, %v2698_v48, %v1869_v46  ;;  %v2072_v55 = vadd.f32 %v2702_v59, %v2071_v11  ;;  %v2026_v48 = vld [vmem:[#allocation4 + $0x10] sm:$0xff] }
 0x4d8   : >> { %v1878_v45 = vsel %vm1875_vm12, %v1877_v60, %v1873_v19  ;;  %v2054_v44 = vsel %vm2053_vm3, %v2700_v14, %v2050_v4  ;;  %v2030_v20 = vmul.f32 0.999, %v2026_v48 }
 0x4d9   : >> { %2524 = vpush %v1878_v45  ;;  %v2076_v51 = vsel %vm2075_vm4, %v2702_v59, %v2072_v55  ;;  %v2059_v13 = vsel %vm2056_vm5, %v2058_v24, %v2054_v44 }
 0x4da   : >> { %v2081_v0 = vsel %vm2078_vm7, %v2080_v8, %v2076_v51 }
 0x500   : >> { %v1928_v21 = vpop.xlane.xlu0 %1927 }
 0x501   : >> { %v1929_v56 = vrot.slane %v1928_v21, 4 }
 0x503   : >> { %v1930_v7 = vadd.f32 %v1929_v56, %v1928_v21 }
 0x505   : >> { %v1931_v63 = vrot.slane %v1930_v7, 2 }
 0x507   : >> { %v1932_v27 = vadd.f32 %v1931_v63, %v1930_v7 }
 0x509   : >> { %v1933_v37 = vrot.slane %v1932_v27, 1 }
 0x50a   : >> { %s4170_s20 = spop %2524 }
 0x50b   : >> { %v1934_v6 = vadd.f32 %v1933_v37, %v1932_v27  ;;  %s2000_s26 = smul.f32 2.0, %s4170_s20 }
 0x50d   : >> { %2526 = vpush %v1934_v6  ;;  %v2001_v26 = vstv %s2000_s26  ;;  %s2246_s26 = scalar_lea.vmem (%p1523_p13), %s4301_s6, %s2859_s25 }
 0x50e   : >> { %2528 = vpush %v2059_v13  ;;  %s2248_s15 = sshll.u32 (%p1523_p13), %s2246_s26, 4  ;;  %s2249_s15 = int_to_ptr.vmem [resolvable:$true] %s2248_s15 }
 0x50f   : >> { %2530 = vpush %v2081_v0  ;;  %s2723_s16 = sshra.s32 (%p1523_p13), %s2249_s15, 4  ;;  %s2724_s16 = int_to_ptr.vmem [resolvable:$true] %s2723_s16 }
 0x510   : > { %s2725_s28 = scalar_lea.vmem (%p1523_p13), %s2724_s16, 1  ;;  %p2730_p3 = scmp.lt.s32.totalorder (%p1523_p13), %s2724_s16, %s4301_s6 }
 0x511   : > { %p2726_p0 = scmp.ne.s32.totalorder (%p1523_p13), %s2724_s16, %s2725_s28  ;;  %p2731_p4 = scmp.lt.s32.totalorder (%p1523_p13), %s2729_s10, %s2725_s28 }
 0x513   : > { %p2727_p1 = pnand (%p1523_p13), %p2726_p0, %p2876_p5  ;;  %p2732_p7 = por (%p1523_p13), %p2731_p4, %p2730_p3 }
 0x515   : > { %p2728_p2 = pneg (%p1523_p13), %p2727_p1 }
 0x517   : > { %p2733_p8 = pnand (%p1523_p13), %p2732_p7, %p2728_p2 }
 0x526   : >> { %v1988_v10 = vpop.f32.mrf.mxu1 }
 0x527   : >> { %v2002_v62 = vmul.f32 %v2001_v26, %v1988_v10 }
 0x529   : >> { %v2016_v3 = vmul.f32 0.1, %v2002_v62  ;;  %v2032_v29 = vmul.f32 %v2002_v62, %v2002_v62 }
 0x52b   : >> { %v4173_v50 = vadd.f32 %v2016_v3, %v2012_v49  ;;  %v2036_v5 = vmul.f32 0.001, %v2032_v29 }
 0x52d   : >> { %v2040_v15 = vadd.f32 %v2036_v5, %v2028_v25  ;;  %2212 = vst.msk [vmem:[#allocation3] sm:$0xff] %vm307_vm1, %v4173_v50 }
 0x52e   : >> { %v1991_v32 = vpop.f32.mrf.mxu1 }
 0x52f   : >> { %2216 = vst.msk [vmem:[#allocation4] sm:$0xff] %vm307_vm1, %v2040_v15  ;;  %v2003_v52 = vmul.f32 %v2001_v26, %v1991_v32 }
 0x531   : >> { %v2017_v43 = vmul.f32 0.1, %v2003_v52  ;;  %v2033_v12 = vmul.f32 %v2003_v52, %v2003_v52 }
 0x533   : >> { %v4178_v9 = vadd.f32 %v2017_v43, %v2013_v16  ;;  %v2037_v53 = vmul.f32 0.001, %v2033_v12 }
 0x535   : >> { %v2041_v57 = vadd.f32 %v2037_v53, %v2029_v22  ;;  %2213 = vst.msk [vmem:[#allocation3 + $0x8] sm:$0xff] %vm307_vm1, %v4178_v9 }
 0x536   : >> { %v1994_v23 = vpop.f32.mrf.mxu1 }
 0x537   : >> { %2217 = vst.msk [vmem:[#allocation4 + $0x8] sm:$0xff] %vm307_vm1, %v2041_v57  ;;  %v2004_v1 = vmul.f32 %v2001_v26, %v1994_v23 }
 0x539   : >> { %v2018_v33 = vmul.f32 0.1, %v2004_v1  ;;  %v2034_v30 = vmul.f32 %v2004_v1, %v2004_v1 }
 0x53b   : >> { %v4183_v60 = vadd.f32 %v2018_v33, %v2014_v2  ;;  %v2038_v46 = vmul.f32 0.001, %v2034_v30 }
 0x53d   : >> { %v2042_v19 = vadd.f32 %v2038_v46, %v2030_v20  ;;  %2214 = vst.msk [vmem:[#allocation3 + $0x10] sm:$0xff] %vm307_vm1, %v4183_v60 }
 0x53e   : >> { %s2527_s9 = spop %2526 }
 0x53f   : >> { %2218 = vst.msk [vmem:[#allocation4 + $0x10] sm:$0xff] %vm307_vm1, %v2042_v19  ;;  %s1936_s12 = smul.f32 %s2527_s9, %s4170_s20  ;;  %s4190_s14 = spop %2528 }
 0x540   : >> { %s2531_s13 = spop %2530  ;;  %v4201_v10 = vstv %s4190_s14 }
 0x541   : >> { %1938 = sst [smem:[%s1937_s11]] %s1936_s12  ;;  %v2083_v45 = vstv %s2531_s13  ;;  %v2062_v48 = vmul.f32 %v4201_v10, %v4173_v50  ;;  %v2063_v1 = vmul.f32 %v4201_v10, %v4178_v9  ;;  %v2064_v2 = vmul.f32 %v4201_v10, %v4183_v60 }
 0x542   : >> { %v2084_v38 = vmul.f32 %v2083_v45, %v2040_v15  ;;  %v2085_v47 = vmul.f32 %v2083_v45, %v2041_v57  ;;  %v2086_v14 = vmul.f32 %v2083_v45, %v2042_v19 }
 0x543   : >> { %v2088_v20 = vmul.f32 0.0005, %v2062_v48  ;;  %v2089_v30 = vmul.f32 0.0005, %v2063_v1  ;;  %v2090_v19 = vmul.f32 0.0005, %v2064_v2 }
 0x544   : >> { %2703 = vrsqrt.f32 %v2084_v38  ;;  %v1997_v59 = vpop.f32.mrf.mxu3  ;;  %vm2099_vm8 = vcmp.eq.f32.partialorder %v2084_v38, inf  ;;  %vm2101_vm9 = vcmp.eq.f32.partialorder %v2084_v38, 0.0  ;;  %v2102_v3 = vand.u32 2147483648, %v2084_v38 }
 0x545   : >> { %2705 = vrsqrt.f32 %v2085_v47  ;;  %v2005_v41 = vmul.f32 %v2001_v26, %v1997_v59  ;;  %vm2111_vm10 = vcmp.eq.f32.partialorder %v2085_v47, inf  ;;  %vm2113_vm11 = vcmp.eq.f32.partialorder %v2085_v47, 0.0 }
 0x546   : >> { %2707 = vrsqrt.f32 %v2086_v14  ;;  %v2114_v35 = vand.u32 2147483648, %v2085_v47  ;;  %vm2123_vm12 = vcmp.eq.f32.partialorder %v2086_v14, inf  ;;  %v2126_v52 = vand.u32 2147483648, %v2086_v14 }
 0x547   : >> { %v2019_v21 = vmul.f32 0.1, %v2005_v41  ;;  %v2035_v56 = vmul.f32 %v2005_v41, %v2005_v41  ;;  %vm2125_vm13 = vcmp.eq.f32.partialorder %v2086_v14, 0.0 }
 0x549   : >> { %v4192_v4 = vadd.f32 %v2019_v21, %v2015_v34  ;;  %v2039_v36 = vmul.f32 0.001, %v2035_v56 }
 0x54a   : >> { %v2704_v11 = vpop.eup %2703 }
 0x54b   : >> { %v2706_v7 = vpop.eup %2705  ;;  %v2093_v54 = vmul.f32 %v2704_v11, %v2084_v38  ;;  %v2043_v27 = vadd.f32 %v2039_v36, %v2031_v39  ;;  %2215 = vst.msk [vmem:[#allocation3 + $0x18] sm:$0xff] %vm307_vm1, %v4192_v4 }
 0x54c   : >> { %v2708_v17 = vpop.eup %2707  ;;  %v2105_v63 = vmul.f32 %v2706_v7, %v2085_v47 }
 0x54d   : >> { %v2094_v55 = vmul.f32 %v2704_v11, %v2093_v54  ;;  %v2117_v40 = vmul.f32 %v2708_v17, %v2086_v14  ;;  %v4196_v37 = vmul.f32 %v2083_v45, %v2043_v27  ;;  %2219 = vst.msk [vmem:[#allocation4 + $0x18] sm:$0xff] %vm307_vm1, %v2043_v27 }
 0x54e   : >> { %v2106_v24 = vmul.f32 %v2706_v7, %v2105_v63 }
 0x54f   : >> { %v2095_v44 = vmul.f32 0.5, %v2094_v55  ;;  %v2118_v8 = vmul.f32 %v2708_v17, %v2117_v40  ;;  %2709 = vrsqrt.f32 %v4196_v37  ;;  %vm2135_vm14 = vcmp.eq.f32.partialorder %v4196_v37, inf }
 0x550   : >> { %v2107_v51 = vmul.f32 0.5, %v2106_v24  ;;  %vm2137_vm15 = vcmp.eq.f32.partialorder %v4196_v37, 0.0  ;;  %v2138_v50 = vand.u32 2147483648, %v4196_v37 }
 0x551   : >> { %v2096_v6 = vsub.f32 1.5, %v2095_v44  ;;  %v2119_v13 = vmul.f32 0.5, %v2118_v8 }
 0x552   : >> { %v2108_v0 = vsub.f32 1.5, %v2107_v51 }
 0x553   : >> { %v2097_v26 = vmul.f32 %v2704_v11, %v2096_v6  ;;  %v2120_v18 = vsub.f32 1.5, %v2119_v13 }
 0x554   : >> { %v2109_v61 = vmul.f32 %v2706_v7, %v2108_v0 }
 0x555   : >> { %v2098_v62 = vmul.f32 %v2097_v26, %v2084_v38  ;;  %v2121_v49 = vmul.f32 %v2708_v17, %v2120_v18  ;;  %v2710_v29 = vpop.eup %2709 }
 0x556   : >> { %v2110_v25 = vmul.f32 %v2109_v61, %v2085_v47  ;;  %v2129_v16 = vmul.f32 %v2710_v29, %v4196_v37 }
 0x557   : >> { %v2100_v5 = vsel %vm2099_vm8, %v2084_v38, %v2098_v62  ;;  %v2122_v15 = vmul.f32 %v2121_v49, %v2086_v14 }
 0x558   : >> { %v2103_v32 = vsel %vm2101_vm9, %v2102_v3, %v2100_v5  ;;  %v2112_v58 = vsel %vm2111_vm10, %v2085_v47, %v2110_v25  ;;  %v2130_v23 = vmul.f32 %v2710_v29, %v2129_v16  ;;  %v2719_v5 = vld [vmem:[#allocation2] sm:$0xff] }
 0x559   : >> { %v2115_v43 = vsel %vm2113_vm11, %v2114_v35, %v2112_v58  ;;  %v2124_v22 = vsel %vm2123_vm12, %v2086_v14, %v2122_v15  ;;  %v2140_v12 = vadd.f32 1e-08, %v2103_v32  ;;  %v2720_v15 = vld [vmem:[#allocation2 + $0x8] sm:$0xff]  ;;  %v2721_v58 = vld [vmem:[#allocation2 + $0x10] sm:$0xff] }
 0x55a   : >> { %v2127_v53 = vsel %vm2125_vm13, %v2126_v52, %v2124_v22  ;;  %v2141_v28 = vadd.f32 1e-08, %v2115_v43  ;;  %v2131_v33 = vmul.f32 0.5, %v2130_v23 }
 0x55b   : >> { %v4204_v57 = vadd.f32 1e-08, %v2127_v53  ;;  %2711 = vrcp.f32 %v2140_v12  ;;  %v2153_v45 = vand.u32 2147483647, %v2140_v12  ;;  %vm2149_vm2 = vweird.f32 %v2140_v12 }
 0x55c   : >> { %2713 = vrcp.f32 %v2141_v28  ;;  %v2132_v38 = vsub.f32 1.5, %v2131_v33  ;;  %v2155_v60 = vand.u32 2147483648, %v2140_v12  ;;  %vm2164_vm3 = vweird.f32 %v2141_v28 }
 0x55d   : >> { %2715 = vrcp.f32 %v4204_v57  ;;  %v2168_v41 = vand.u32 2147483647, %v2141_v28  ;;  %vm4217_vm4 = vcmp.eq.f32.partialorder %v2153_v45, 8.507059e+37  ;;  %v2170_v56 = vand.u32 2147483648, %v2141_v28 }
 0x55e   : >> { %v2133_v31 = vmul.f32 %v2710_v29, %v2132_v38  ;;  %v2183_v36 = vand.u32 2147483647, %v4204_v57  ;;  %v2185_v63 = vand.u32 2147483648, %v4204_v57  ;;  %v2156_v44 = vor.u32 1.1754944e-38, %v2155_v60 }
 0x55f   : >> { %vm2179_vm10 = vweird.f32 %v4204_v57  ;;  %vm2169_vm12 = vcmp.eq.f32.partialorder %v2168_v41, 8.507059e+37  ;;  %v2171_v13 = vor.u32 1.1754944e-38, %v2170_v56  ;;  %v2065_v53 = vmul.f32 %v4201_v10, %v4192_v4 }
 0x560   : >> { %v2134_v11 = vmul.f32 %v2133_v31, %v4196_v37 }
 0x561   : >> { %v2712_v46 = vpop.eup %2711  ;;  %v2091_v1 = vmul.f32 0.0005, %v2065_v53 }
 0x562   : >> { %v2714_v47 = vpop.eup %2713  ;;  %v2145_v14 = vmul.f32 %v2712_v46, %v2140_v12  ;;  %vm2150_vm5 = vweird.f32 %v2712_v46  ;;  %v2136_v55 = vsel %vm2135_vm14, %v4196_v37, %v2134_v11  ;;  %v2186_v37 = vor.u32 1.1754944e-38, %v2185_v63 }
 0x563   : >> { %v2716_v9 = vpop.eup %2715  ;;  %v2160_v59 = vmul.f32 %v2714_v47, %v2141_v28  ;;  %vm2165_vm7 = vweird.f32 %v2714_v47  ;;  %v2139_v24 = vsel %vm2137_vm15, %v2138_v50, %v2136_v55  ;;  %vm2151_vm9 = vmor %vm2149_vm2, %vm2150_vm5  ;;  %vm2184_vm14 = vcmp.eq.f32.partialorder %v2183_v36, 8.507059e+37 }
 0x564   : >> { %v2146_v42 = vsub.f32 1.0, %v2145_v14  ;;  %v2175_v34 = vmul.f32 %v2716_v9, %v4204_v57  ;;  %vm2180_vm8 = vweird.f32 %v2716_v9  ;;  %v2143_v51 = vadd.f32 1e-08, %v2139_v24  ;;  %vm2166_vm11 = vmor %vm2164_vm3, %vm2165_vm7 }
 0x565   : >> { %v2161_v39 = vsub.f32 1.0, %v2160_v59  ;;  %vm2181_vm13 = vmor %vm2179_vm10, %vm2180_vm8 }
 0x566   : >> { %v2147_v7 = vmul.f32 %v2712_v46, %v2146_v42  ;;  %v2176_v54 = vsub.f32 1.0, %v2175_v34  ;;  %2717 = vrcp.f32 %v2143_v51  ;;  %v2200_v12 = vand.u32 2147483648, %v2143_v51 }
 0x567   : >> { %v2162_v17 = vmul.f32 %v2714_v47, %v2161_v39  ;;  %v2198_v57 = vand.u32 2147483647, %v2143_v51  ;;  %vm2194_vm2 = vweird.f32 %v2143_v51 }
 0x568   : >> { %v2148_v40 = vadd.f32 %v2712_v46, %v2147_v7  ;;  %v2177_v27 = vmul.f32 %v2716_v9, %v2176_v54  ;;  %v2201_v48 = vor.u32 1.1754944e-38, %v2200_v12 }
 0x569   : >> { %v2163_v8 = vadd.f32 %v2714_v47, %v2162_v17 }
 0x56a   : >> { %v2152_v6 = vsel %vm2151_vm9, %v2712_v46, %v2148_v40  ;;  %v2178_v0 = vadd.f32 %v2716_v9, %v2177_v27 }
 0x56b   : >> { %v2157_v26 = vsel %vm4217_vm4, %v2156_v44, %v2152_v6  ;;  %v2167_v18 = vsel %vm2166_vm11, %v2714_v47, %v2163_v8  ;;  %vm2199_vm4 = vcmp.eq.f32.partialorder %v2198_v57, 8.507059e+37 }
 0x56c   : >> { %v2158_v61 = vmul.f32 %v2157_v26, %v2088_v20  ;;  %v2172_v62 = vsel %vm2169_vm12, %v2171_v13, %v2167_v18  ;;  %v2182_v49 = vsel %vm2181_vm13, %v2716_v9, %v2178_v0  ;;  %v2718_v16 = vpop.eup %2717 }
 0x56d   : >> { %v2173_v3 = vmul.f32 %v2172_v62, %v2089_v30  ;;  %v2187_v25 = vsel %vm2184_vm14, %v2186_v37, %v2182_v49  ;;  %v2190_v43 = vmul.f32 %v2718_v16, %v2143_v51  ;;  %vm2195_vm15 = vweird.f32 %v2718_v16  ;;  %v2722_v30 = vld [vmem:[#allocation2 + $0x18] sm:$0xff] }
 0x56e   : >> { %v2188_v29 = vmul.f32 %v2187_v25, %v2090_v19  ;;  %v2204_v35 = vsub.f32 %v2719_v5, %v2158_v61  ;;  %vm2196_vm3 = vmor %vm2194_vm2, %vm2195_vm15 }
 0x56f   : >> { %v2205_v32 = vsub.f32 %v2720_v15, %v2173_v3  ;;  %v2191_v22 = vsub.f32 1.0, %v2190_v43 }
 0x570   : >> { %v2206_v52 = vsub.f32 %v2721_v58, %v2188_v29  ;;  %2208 = vst.msk [vmem:[#allocation2] sm:$0xff] %vm307_vm1, %v2204_v35 }
 0x571   : >> { %2209 = vst.msk [vmem:[#allocation2 + $0x8] sm:$0xff] %vm307_vm1, %v2205_v32  ;;  %v2192_v28 = vmul.f32 %v2718_v16, %v2191_v22 }
 0x572   : >> { %2210 = vst.msk [vmem:[#allocation2 + $0x10] sm:$0xff] %vm307_vm1, %v2206_v52 }
 0x573   : >> { %v2193_v23 = vadd.f32 %v2718_v16, %v2192_v28 }
 0x575   : >> { %v2197_v2 = vsel %vm2196_vm3, %v2718_v16, %v2193_v23 }
 0x576   : >> { %v2202_v33 = vsel %vm2199_vm4, %v2201_v48, %v2197_v2 }
 0x577   : >> { %v2203_v20 = vmul.f32 %v2202_v33, %v2091_v1  ;;  %1525 = sbr.rel (!%p1523_p13) target bundleno = 957 (0x3bd), region = 108  ;;  %v2220_v4 = vld [vmem:[#allocation2] sm:$0xff] (%p1523_p13) }
 0x578   : > { %v2221_v10 = vld [vmem:[#allocation2 + $0x8] sm:$0xff] (%p1523_p13)  ;;  %2224 = vst.msk [vmem:[%s2919_s18] sm:$0xff] (%p1523_p13), %vm307_vm1, %v2220_v4 }
 0x579   : >> { %v2207_v46 = vsub.f32 %v2722_v30, %v2203_v20  ;;  %v2222_v19 = vld [vmem:[#allocation2 + $0x10] sm:$0xff] (%p1523_p13)  ;;  %2225 = vst.msk [vmem:[%s2919_s18 + $0x8] sm:$0xff] (%p1523_p13), %vm307_vm1, %v2221_v10 }
 0x57a   : > { %2226 = vst.msk [vmem:[%s2919_s18 + $0x10] sm:$0xff] (%p1523_p13), %vm307_vm1, %v2222_v19 }
 0x57b   : >> { %2211 = vst.msk [vmem:[#allocation2 + $0x18] sm:$0xff] %vm307_vm1, %v2207_v46 }
 0x582   : > { %v2223_v45 = vld [vmem:[#allocation2 + $0x18] sm:$0xff] }
 0x583   : > { %2736 = shalt.err (!%p2733_p8)
}
 0x584   : > { %2532 = dma.smem_to_vmem (%p2876_p5), %s3852_s29, 16, %s2249_s15, %s2234_s3   ;;  %2227 = vst.msk [vmem:[%s2919_s18 + $0x18] sm:$0xff] %vm307_vm1, %v2223_v45 }
 0x585 PF: > { %p2473_p9 = scmp.lt.s32.totalorder %s2783_s24, 2 }
 0x586   : > { %s2268_s12 = sand.u32 (!%p2473_p9), 1, %s2771_s21  }
 0x587   : > { %2255 = sbr.rel (%p2473_p9) target bundleno = 1423 (0x58f), region = 59  ;;  %s2269_s14 = scalar_lea.sflag (!%p2473_p9), [#allocation6], %s2268_s12 }
 0x58c   : > { %2766 = dma.done.wait (%p2880_p6), %s2269_s14, 16  }
 0x58d   : > { %2768 = vsyncadd (%p2880_p6), %s2269_s14, 4294967280 }
 0x58e   : > { %2275 = sfence }
 0x58f PF: > { %p17_p5 = scmp.ge.s32.totalorder %s2863_s27, 4   ;;  %s4316_s21 = smov %s2775_s22 }
 0x590   : > { %s4317_s22 = smov %s2779_s23  ;;  %s4318_s23 = smov %s2874_s30 }
 0x591   : > { %s4319_s24 = smov %s2863_s27  ;;  %19 = sbr.rel (!%p17_p5) target bundleno = 6 (0x6), region = 119 }
 0x596   :  { %2276 = vsyncpa [#allocation6], 1 }
 0x597   :  { %2278 = vsyncpa [#allocation6 + $0x1], 1 }

</bundles_post_ra>
